<compile_context>
chip_gen: v6e
topology: v6e:2x2x1
jax: 0.10.0
libtpu: 0.0.40
codegen_flags: <defaults>
</compile_context>

<pallas_src>
import jax
import jax.numpy as jnp
from jax import lax
from jax.experimental import pallas as pl
from jax.experimental.pallas import tpu as pltpu

EMB_DIM = 16
HIDDEN = 32
VOCAB = 20
TAGSET = 8
SEQ = 8

# ---- packed weight-slab layout (rows, all 8-aligned; 128 lanes = 4*HIDDEN) ----
VOCAB_PAD = 24                      # VOCAB padded up to a sublane multiple
W_HH0_OFF = VOCAB_PAD               # 24
W_IH1_OFF = W_HH0_OFF + HIDDEN      # 56
W_HH1_OFF = W_IH1_OFF + HIDDEN      # 88
W_OUT_OFF = W_HH1_OFF + HIDDEN      # 120
BIAS_OFF = W_OUT_OFF + HIDDEN       # 152  (row 0: b0, row 1: b1, row 2: b_out)
SLAB_ROWS = BIAS_OFF + 8            # 160


def lstm_tagger_kernel(sent_ref, w_ref, out_ref):
    S = sent_ref.shape[0]
    H = HIDDEN

    # ---- static, 8-aligned slices of the packed weight slab ----
    emb_gates = w_ref[0:VOCAB_PAD, :]                     # (24, 4H) = embedding @ w_ih0 (g cols x2)
    w_hh0 = w_ref[W_HH0_OFF:W_HH0_OFF + H, :]             # (H, 4H)
    w_ih1 = w_ref[W_IH1_OFF:W_IH1_OFF + H, :]             # (H, 4H)
    w_hh1 = w_ref[W_HH1_OFF:W_HH1_OFF + H, :]             # (H, 4H)
    w_out = w_ref[W_OUT_OFF:W_OUT_OFF + H, :]             # (H, 4H) (only first TAGSET cols nonzero)
    biases = w_ref[BIAS_OFF:BIAS_OFF + 8, :]              # (8, 4H)
    b0 = biases[0:1, :]
    b1 = biases[1:2, :]
    b_out = biases[2:3, :]

    # ---- embedding gather fused with layer-0 input projection: one MXU push ----
    ids = sent_ref[...]                                    # (S, 1) int32
    vocab_iota = lax.broadcasted_iota(jnp.int32, (S, VOCAB_PAD), 1)
    onehot = (vocab_iota == ids).astype(jnp.float32)       # (S, 24)
    gates_x0 = jnp.dot(onehot, emb_gates,
                       preferred_element_type=jnp.float32) + b0   # (S, 4H)

    def lstm_step(gates, c):
        # g-gate columns were pre-scaled by 2 at init, so one sigmoid over the
        # whole (1,4H) row covers i/f/o and yields tanh(g) = 2*sigmoid(2g) - 1.
        s = jax.nn.sigmoid(gates)                          # 1 EUP pass over 4H
        i = s[:, 0:H]
        f = s[:, H:2 * H]
        o = s[:, 3 * H:4 * H]
        gg = 2.0 * s[:, 2 * H:3 * H] - 1.0                 # == tanh(g)
        c_new = f * c + i * gg
        h_new = o * jnp.tanh(c_new)                        # 1 EUP pass over H
        return h_new, c_new

    zero = jnp.zeros((1, H), jnp.float32)
    h0 = c0 = h1 = c1 = zero
    h1_rows = []
    # Fully unrolled recurrence: S is static, all slices static.
    for t in range(S):
        # Layer-1 recurrent contribution depends only on h1[t-1]; issue it here
        # so it overlaps this step's layer-0 serial chain (no concat needed).
        r1 = jnp.dot(h1, w_hh1, preferred_element_type=jnp.float32) + b1
        # ---- layer 0 ----
        g0 = gates_x0[t:t + 1, :] + jnp.dot(h0, w_hh0,
                                            preferred_element_type=jnp.float32)
        h0, c0 = lstm_step(g0, c0)
        # TODO(synk): nn.LSTM inter-layer dropout (p=0.3) is training-only; eval
        # semantics (identity) are implemented here.
        # ---- layer 1 (only the h0[t]-dependent matmul sits on the serial path) ----
        g1 = r1 + jnp.dot(h0, w_ih1, preferred_element_type=jnp.float32)
        h1, c1 = lstm_step(g1, c1)
        h1_rows.append(h1)

    lstm_out = jnp.concatenate(h1_rows, axis=0)            # (S, H), in vregs

    # ---- hidden2tag (lane-padded weights) + log_softmax over the valid TAGSET lanes ----
    tag_full = jnp.dot(lstm_out, w_out,
                       preferred_element_type=jnp.float32) + b_out   # (S, 4H)
    tag = tag_full[:, 0:TAGSET]                            # (S, T)
    m = jnp.max(tag, axis=1, keepdims=True)
    lse = m + jnp.log(jnp.sum(jnp.exp(tag - m), axis=1, keepdims=True))
    out_ref[...] = tag - lse


def lstm_tagger_forward(sentence, slab):
    S = sentence.shape[0]
    sent2d = sentence.reshape(S, 1).astype(jnp.int32)
    return pl.pallas_call(
        lstm_tagger_kernel,
        out_shape=jax.ShapeDtypeStruct((S, TAGSET), jnp.float32),
        in_specs=[pl.BlockSpec(memory_space=pltpu.MemorySpace.VMEM),
                  pl.BlockSpec(memory_space=pltpu.MemorySpace.VMEM)],
        out_specs=pl.BlockSpec(memory_space=pltpu.MemorySpace.VMEM),
    )(sent2d, slab)


def pack_weights(p):
    """Pack all parameters into one contiguous (SLAB_ROWS, 4H) f32 slab.

    The x2 scaling of the g-gate columns (2H:3H) is folded in here, and the
    embedding table is pre-multiplied by the layer-0 input weights.
    """
    H = HIDDEN
    G = 4 * H

    def scale_g(w):
        return w.at[..., 2 * H:3 * H].multiply(2.0)

    w_ih0 = scale_g(p["w_ih0_t"])                          # (E, 4H)
    w_hh0 = scale_g(p["w_hh0_t"])                          # (H, 4H)
    b0 = scale_g(p["b0"])                                  # (1, 4H)
    w_ih1 = scale_g(p["w_ih1_t"])
    w_hh1 = scale_g(p["w_hh1_t"])
    b1 = scale_g(p["b1"])

    emb_gates = p["embedding"] @ w_ih0                     # (VOCAB, 4H)
    emb_gates = jnp.pad(emb_gates, ((0, VOCAB_PAD - VOCAB), (0, 0)))

    w_out = jnp.pad(p["w_out_t"], ((0, 0), (0, G - TAGSET)))   # (H, 4H)
    b_out = jnp.pad(p["b_out"], ((0, 0), (0, G - TAGSET)))     # (1, 4H)

    bias_block = jnp.zeros((8, G), jnp.float32)
    bias_block = bias_block.at[0].set(b0[0]).at[1].set(b1[0]).at[2].set(b_out[0])

    slab = jnp.concatenate([emb_gates, w_hh0, w_ih1, w_hh1, w_out, bias_block],
                           axis=0)
    assert slab.shape == (SLAB_ROWS, G), slab.shape
    return slab


def reference_forward(sentence, params):
    """Pure-JAX reference with identical semantics (eval-mode LSTM)."""
    H = HIDDEN
    emb = params["embedding"][sentence]

    def cell(x, h, c, w_ih_t, w_hh_t, b):
        g = x @ w_ih_t + h @ w_hh_t + b
        i = jax.nn.sigmoid(g[:, 0:H]); f = jax.nn.sigmoid(g[:, H:2 * H])
        gg = jnp.tanh(g[:, 2 * H:3 * H]); o = jax.nn.sigmoid(g[:, 3 * H:4 * H])
        c = f * c + i * gg
        return o * jnp.tanh(c), c

    h0 = c0 = h1 = c1 = jnp.zeros((1, H), jnp.float32)
    outs = []
    for t in range(emb.shape[0]):
        x = emb[t:t + 1]
        h0, c0 = cell(x, h0, c0, params["w_ih0_t"], params["w_hh0_t"], params["b0"])
        h1, c1 = cell(h0, h1, c1, params["w_ih1_t"], params["w_hh1_t"], params["b1"])
        outs.append(h1)
    lstm_out = jnp.concatenate(outs, axis=0)
    tag = lstm_out @ params["w_out_t"] + params["b_out"]
    return jax.nn.log_softmax(tag, axis=1)


def init_params(key):
    ks = jax.random.split(key, 12)
    bound = 1.0 / jnp.sqrt(jnp.float32(HIDDEN))

    def u(k, shape):
        return jax.random.uniform(k, shape, jnp.float32, -bound, bound)

    return {
        "embedding": jax.random.normal(ks[0], (VOCAB, EMB_DIM), jnp.float32),
        # layer 0: input E -> hidden H (weights pre-transposed; biases b_ih + b_hh folded)
        "w_ih0_t": u(ks[1], (EMB_DIM, 4 * HIDDEN)),
        "w_hh0_t": u(ks[2], (HIDDEN, 4 * HIDDEN)),
        "b0": u(ks[3], (1, 4 * HIDDEN)) + u(ks[4], (1, 4 * HIDDEN)),
        # layer 1: input H -> hidden H
        "w_ih1_t": u(ks[5], (HIDDEN, 4 * HIDDEN)),
        "w_hh1_t": u(ks[6], (HIDDEN, 4 * HIDDEN)),
        "b1": u(ks[7], (1, 4 * HIDDEN)) + u(ks[8], (1, 4 * HIDDEN)),
        # hidden2tag
        "w_out_t": u(ks[9], (HIDDEN, TAGSET)),
        "b_out": u(ks[10], (1, TAGSET)),
    }


if __name__ == "__main__":
    key = jax.random.PRNGKey(0)
    pkey, skey = jax.random.split(key)
    params = init_params(pkey)
    slab = pack_weights(params)
    sentence = jax.random.randint(skey, (SEQ,), 0, VOCAB, dtype=jnp.int32)

    out = lstm_tagger_forward(sentence, slab)
    out = jax.block_until_ready(out)

    ref = reference_forward(sentence, params)
    assert out.shape == (SEQ, TAGSET), out.shape
    assert jnp.allclose(out, ref, atol=1e-4, rtol=1e-4), float(jnp.max(jnp.abs(out - ref)))
    print("KERNEL_OK")
</pallas_src>

<mosaic_0001>
module attributes {stable_mosaic.version = 11 : i64} {
  func.func @lstm_tagger_kernel(%arg0: memref<8x1xi32, #tpu.memory_space<vmem>>, %arg1: memref<160x128xf32, #tpu.memory_space<vmem>>, %arg2: memref<8x8xf32, #tpu.memory_space<vmem>>) attributes {dimension_semantics = [], scalar_prefetch = 0 : i64, scratch_operands = 0 : i64, tpu.core_type = #tpu.core_type<tc>} {
    %c0 = arith.constant 0 : index
    %c0_0 = arith.constant 0 : index
    %0 = vector.load %arg1[%c0, %c0_0] : memref<160x128xf32, #tpu.memory_space<vmem>>, vector<24x128xf32>
    %c24 = arith.constant 24 : index
    %c0_1 = arith.constant 0 : index
    %1 = vector.load %arg1[%c24, %c0_1] : memref<160x128xf32, #tpu.memory_space<vmem>>, vector<32x128xf32>
    %c56 = arith.constant 56 : index
    %c0_2 = arith.constant 0 : index
    %2 = vector.load %arg1[%c56, %c0_2] : memref<160x128xf32, #tpu.memory_space<vmem>>, vector<32x128xf32>
    %c88 = arith.constant 88 : index
    %c0_3 = arith.constant 0 : index
    %3 = vector.load %arg1[%c88, %c0_3] : memref<160x128xf32, #tpu.memory_space<vmem>>, vector<32x128xf32>
    %c120 = arith.constant 120 : index
    %c0_4 = arith.constant 0 : index
    %4 = vector.load %arg1[%c120, %c0_4] : memref<160x128xf32, #tpu.memory_space<vmem>>, vector<32x128xf32>
    %c152 = arith.constant 152 : index
    %c0_5 = arith.constant 0 : index
    %5 = vector.load %arg1[%c152, %c0_5] : memref<160x128xf32, #tpu.memory_space<vmem>>, vector<8x128xf32>
    %6 = vector.extract_strided_slice %5 {offsets = [0, 0], sizes = [1, 128], strides = [1, 1]} : vector<8x128xf32> to vector<1x128xf32>
    %7 = vector.extract_strided_slice %5 {offsets = [1, 0], sizes = [1, 128], strides = [1, 1]} : vector<8x128xf32> to vector<1x128xf32>
    %8 = vector.extract_strided_slice %5 {offsets = [2, 0], sizes = [1, 128], strides = [1, 1]} : vector<8x128xf32> to vector<1x128xf32>
    %c0_6 = arith.constant 0 : index
    %c0_7 = arith.constant 0 : index
    %9 = vector.load %arg0[%c0_6, %c0_7] : memref<8x1xi32, #tpu.memory_space<vmem>>, vector<8x1xi32>
    %10 = tpu.iota {dimensions = array<i32: 1>} : vector<8x24xi32>
    %11 = vector.broadcast %9 : vector<8x1xi32> to vector<8x24xi32>
    %12 = arith.cmpi eq, %10, %11 : vector<8x24xi32>
    %13 = arith.extui %12 : vector<8x24xi1> to vector<8x24xi32>
    %14 = arith.sitofp %13 : vector<8x24xi32> to vector<8x24xf32>
    %cst = arith.constant dense<0.000000e+00> : vector<8x128xf32>
    %15 = tpu.matmul %14, %0, %cst {dimension_numbers = #tpu.dot_dimension_numbers<[1], [0], [0], [1], [0, 0, 1, 1], [], []>} : vector<8x24xf32>, vector<24x128xf32>, vector<8x128xf32> -> vector<8x128xf32>
    %16 = vector.broadcast %6 : vector<1x128xf32> to vector<8x128xf32>
    %17 = arith.addf %15, %16 : vector<8x128xf32>
    %cst_8 = arith.constant 0.000000e+00 : f32
    %18 = vector.broadcast %cst_8 : f32 to vector<1x32xf32>
    %cst_9 = arith.constant dense<0.000000e+00> : vector<1x128xf32>
    %19 = tpu.matmul %18, %3, %cst_9 {dimension_numbers = #tpu.dot_dimension_numbers<[1], [0], [0], [1], [0, 0, 1, 1], [], []>} : vector<1x32xf32>, vector<32x128xf32>, vector<1x128xf32> -> vector<1x128xf32>
    %20 = arith.addf %19, %7 : vector<1x128xf32>
    %21 = vector.extract_strided_slice %17 {offsets = [0, 0], sizes = [1, 128], strides = [1, 1]} : vector<8x128xf32> to vector<1x128xf32>
    %cst_10 = arith.constant dense<0.000000e+00> : vector<1x128xf32>
    %22 = tpu.matmul %18, %1, %cst_10 {dimension_numbers = #tpu.dot_dimension_numbers<[1], [0], [0], [1], [0, 0, 1, 1], [], []>} : vector<1x32xf32>, vector<32x128xf32>, vector<1x128xf32> -> vector<1x128xf32>
    %23 = arith.addf %21, %22 : vector<1x128xf32>
    %24 = arith.negf %23 : vector<1x128xf32>
    %25 = math.exp %24 : vector<1x128xf32>
    %cst_11 = arith.constant 1.000000e+00 : f32
    %26 = vector.broadcast %cst_11 : f32 to vector<1x128xf32>
    %27 = arith.addf %26, %25 : vector<1x128xf32>
    %28 = arith.divf %26, %27 : vector<1x128xf32>
    %29 = vector.extract_strided_slice %28 {offsets = [0, 0], sizes = [1, 32], strides = [1, 1]} : vector<1x128xf32> to vector<1x32xf32>
    %30 = vector.extract_strided_slice %28 {offsets = [0, 32], sizes = [1, 32], strides = [1, 1]} : vector<1x128xf32> to vector<1x32xf32>
    %31 = vector.extract_strided_slice %28 {offsets = [0, 96], sizes = [1, 32], strides = [1, 1]} : vector<1x128xf32> to vector<1x32xf32>
    %32 = vector.extract_strided_slice %28 {offsets = [0, 64], sizes = [1, 32], strides = [1, 1]} : vector<1x128xf32> to vector<1x32xf32>
    %cst_12 = arith.constant 2.000000e+00 : f32
    %33 = vector.broadcast %cst_12 : f32 to vector<1x32xf32>
    %34 = arith.mulf %33, %32 : vector<1x32xf32>
    %cst_13 = arith.constant 1.000000e+00 : f32
    %35 = vector.broadcast %cst_13 : f32 to vector<1x32xf32>
    %36 = arith.subf %34, %35 : vector<1x32xf32>
    %37 = arith.mulf %30, %18 : vector<1x32xf32>
    %38 = arith.mulf %29, %36 : vector<1x32xf32>
    %39 = arith.addf %37, %38 : vector<1x32xf32>
    %40 = math.tanh %39 : vector<1x32xf32>
    %41 = arith.mulf %31, %40 : vector<1x32xf32>
    %cst_14 = arith.constant dense<0.000000e+00> : vector<1x128xf32>
    %42 = tpu.matmul %41, %2, %cst_14 {dimension_numbers = #tpu.dot_dimension_numbers<[1], [0], [0], [1], [0, 0, 1, 1], [], []>} : vector<1x32xf32>, vector<32x128xf32>, vector<1x128xf32> -> vector<1x128xf32>
    %43 = arith.addf %20, %42 : vector<1x128xf32>
    %44 = arith.negf %43 : vector<1x128xf32>
    %45 = math.exp %44 : vector<1x128xf32>
    %cst_15 = arith.constant 1.000000e+00 : f32
    %46 = vector.broadcast %cst_15 : f32 to vector<1x128xf32>
    %47 = arith.addf %46, %45 : vector<1x128xf32>
    %48 = arith.divf %46, %47 : vector<1x128xf32>
    %49 = vector.extract_strided_slice %48 {offsets = [0, 0], sizes = [1, 32], strides = [1, 1]} : vector<1x128xf32> to vector<1x32xf32>
    %50 = vector.extract_strided_slice %48 {offsets = [0, 32], sizes = [1, 32], strides = [1, 1]} : vector<1x128xf32> to vector<1x32xf32>
    %51 = vector.extract_strided_slice %48 {offsets = [0, 96], sizes = [1, 32], strides = [1, 1]} : vector<1x128xf32> to vector<1x32xf32>
    %52 = vector.extract_strided_slice %48 {offsets = [0, 64], sizes = [1, 32], strides = [1, 1]} : vector<1x128xf32> to vector<1x32xf32>
    %cst_16 = arith.constant 2.000000e+00 : f32
    %53 = vector.broadcast %cst_16 : f32 to vector<1x32xf32>
    %54 = arith.mulf %53, %52 : vector<1x32xf32>
    %cst_17 = arith.constant 1.000000e+00 : f32
    %55 = vector.broadcast %cst_17 : f32 to vector<1x32xf32>
    %56 = arith.subf %54, %55 : vector<1x32xf32>
    %57 = arith.mulf %50, %18 : vector<1x32xf32>
    %58 = arith.mulf %49, %56 : vector<1x32xf32>
    %59 = arith.addf %57, %58 : vector<1x32xf32>
    %60 = math.tanh %59 : vector<1x32xf32>
    %61 = arith.mulf %51, %60 : vector<1x32xf32>
    %cst_18 = arith.constant dense<0.000000e+00> : vector<1x128xf32>
    %62 = tpu.matmul %61, %3, %cst_18 {dimension_numbers = #tpu.dot_dimension_numbers<[1], [0], [0], [1], [0, 0, 1, 1], [], []>} : vector<1x32xf32>, vector<32x128xf32>, vector<1x128xf32> -> vector<1x128xf32>
    %63 = arith.addf %62, %7 : vector<1x128xf32>
    %64 = vector.extract_strided_slice %17 {offsets = [1, 0], sizes = [1, 128], strides = [1, 1]} : vector<8x128xf32> to vector<1x128xf32>
    %cst_19 = arith.constant dense<0.000000e+00> : vector<1x128xf32>
    %65 = tpu.matmul %41, %1, %cst_19 {dimension_numbers = #tpu.dot_dimension_numbers<[1], [0], [0], [1], [0, 0, 1, 1], [], []>} : vector<1x32xf32>, vector<32x128xf32>, vector<1x128xf32> -> vector<1x128xf32>
    %66 = arith.addf %64, %65 : vector<1x128xf32>
    %67 = arith.negf %66 : vector<1x128xf32>
    %68 = math.exp %67 : vector<1x128xf32>
    %cst_20 = arith.constant 1.000000e+00 : f32
    %69 = vector.broadcast %cst_20 : f32 to vector<1x128xf32>
    %70 = arith.addf %69, %68 : vector<1x128xf32>
    %71 = arith.divf %69, %70 : vector<1x128xf32>
    %72 = vector.extract_strided_slice %71 {offsets = [0, 0], sizes = [1, 32], strides = [1, 1]} : vector<1x128xf32> to vector<1x32xf32>
    %73 = vector.extract_strided_slice %71 {offsets = [0, 32], sizes = [1, 32], strides = [1, 1]} : vector<1x128xf32> to vector<1x32xf32>
    %74 = vector.extract_strided_slice %71 {offsets = [0, 96], sizes = [1, 32], strides = [1, 1]} : vector<1x128xf32> to vector<1x32xf32>
    %75 = vector.extract_strided_slice %71 {offsets = [0, 64], sizes = [1, 32], strides = [1, 1]} : vector<1x128xf32> to vector<1x32xf32>
    %cst_21 = arith.constant 2.000000e+00 : f32
    %76 = vector.broadcast %cst_21 : f32 to vector<1x32xf32>
    %77 = arith.mulf %76, %75 : vector<1x32xf32>
    %cst_22 = arith.constant 1.000000e+00 : f32
    %78 = vector.broadcast %cst_22 : f32 to vector<1x32xf32>
    %79 = arith.subf %77, %78 : vector<1x32xf32>
    %80 = arith.mulf %73, %39 : vector<1x32xf32>
    %81 = arith.mulf %72, %79 : vector<1x32xf32>
    %82 = arith.addf %80, %81 : vector<1x32xf32>
    %83 = math.tanh %82 : vector<1x32xf32>
    %84 = arith.mulf %74, %83 : vector<1x32xf32>
    %cst_23 = arith.constant dense<0.000000e+00> : vector<1x128xf32>
    %85 = tpu.matmul %84, %2, %cst_23 {dimension_numbers = #tpu.dot_dimension_numbers<[1], [0], [0], [1], [0, 0, 1, 1], [], []>} : vector<1x32xf32>, vector<32x128xf32>, vector<1x128xf32> -> vector<1x128xf32>
    %86 = arith.addf %63, %85 : vector<1x128xf32>
    %87 = arith.negf %86 : vector<1x128xf32>
    %88 = math.exp %87 : vector<1x128xf32>
    %cst_24 = arith.constant 1.000000e+00 : f32
    %89 = vector.broadcast %cst_24 : f32 to vector<1x128xf32>
    %90 = arith.addf %89, %88 : vector<1x128xf32>
    %91 = arith.divf %89, %90 : vector<1x128xf32>
    %92 = vector.extract_strided_slice %91 {offsets = [0, 0], sizes = [1, 32], strides = [1, 1]} : vector<1x128xf32> to vector<1x32xf32>
    %93 = vector.extract_strided_slice %91 {offsets = [0, 32], sizes = [1, 32], strides = [1, 1]} : vector<1x128xf32> to vector<1x32xf32>
    %94 = vector.extract_strided_slice %91 {offsets = [0, 96], sizes = [1, 32], strides = [1, 1]} : vector<1x128xf32> to vector<1x32xf32>
    %95 = vector.extract_strided_slice %91 {offsets = [0, 64], sizes = [1, 32], strides = [1, 1]} : vector<1x128xf32> to vector<1x32xf32>
    %cst_25 = arith.constant 2.000000e+00 : f32
    %96 = vector.broadcast %cst_25 : f32 to vector<1x32xf32>
    %97 = arith.mulf %96, %95 : vector<1x32xf32>
    %cst_26 = arith.constant 1.000000e+00 : f32
    %98 = vector.broadcast %cst_26 : f32 to vector<1x32xf32>
    %99 = arith.subf %97, %98 : vector<1x32xf32>
    %100 = arith.mulf %93, %59 : vector<1x32xf32>
    %101 = arith.mulf %92, %99 : vector<1x32xf32>
    %102 = arith.addf %100, %101 : vector<1x32xf32>
    %103 = math.tanh %102 : vector<1x32xf32>
    %104 = arith.mulf %94, %103 : vector<1x32xf32>
    %cst_27 = arith.constant dense<0.000000e+00> : vector<1x128xf32>
    %105 = tpu.matmul %104, %3, %cst_27 {dimension_numbers = #tpu.dot_dimension_numbers<[1], [0], [0], [1], [0, 0, 1, 1], [], []>} : vector<1x32xf32>, vector<32x128xf32>, vector<1x128xf32> -> vector<1x128xf32>
    %106 = arith.addf %105, %7 : vector<1x128xf32>
    %107 = vector.extract_strided_slice %17 {offsets = [2, 0], sizes = [1, 128], strides = [1, 1]} : vector<8x128xf32> to vector<1x128xf32>
    %cst_28 = arith.constant dense<0.000000e+00> : vector<1x128xf32>
    %108 = tpu.matmul %84, %1, %cst_28 {dimension_numbers = #tpu.dot_dimension_numbers<[1], [0], [0], [1], [0, 0, 1, 1], [], []>} : vector<1x32xf32>, vector<32x128xf32>, vector<1x128xf32> -> vector<1x128xf32>
    %109 = arith.addf %107, %108 : vector<1x128xf32>
    %110 = arith.negf %109 : vector<1x128xf32>
    %111 = math.exp %110 : vector<1x128xf32>
    %cst_29 = arith.constant 1.000000e+00 : f32
    %112 = vector.broadcast %cst_29 : f32 to vector<1x128xf32>
    %113 = arith.addf %112, %111 : vector<1x128xf32>
    %114 = arith.divf %112, %113 : vector<1x128xf32>
    %115 = vector.extract_strided_slice %114 {offsets = [0, 0], sizes = [1, 32], strides = [1, 1]} : vector<1x128xf32> to vector<1x32xf32>
    %116 = vector.extract_strided_slice %114 {offsets = [0, 32], sizes = [1, 32], strides = [1, 1]} : vector<1x128xf32> to vector<1x32xf32>
    %117 = vector.extract_strided_slice %114 {offsets = [0, 96], sizes = [1, 32], strides = [1, 1]} : vector<1x128xf32> to vector<1x32xf32>
    %118 = vector.extract_strided_slice %114 {offsets = [0, 64], sizes = [1, 32], strides = [1, 1]} : vector<1x128xf32> to vector<1x32xf32>
    %cst_30 = arith.constant 2.000000e+00 : f32
    %119 = vector.broadcast %cst_30 : f32 to vector<1x32xf32>
    %120 = arith.mulf %119, %118 : vector<1x32xf32>
    %cst_31 = arith.constant 1.000000e+00 : f32
    %121 = vector.broadcast %cst_31 : f32 to vector<1x32xf32>
    %122 = arith.subf %120, %121 : vector<1x32xf32>
    %123 = arith.mulf %116, %82 : vector<1x32xf32>
    %124 = arith.mulf %115, %122 : vector<1x32xf32>
    %125 = arith.addf %123, %124 : vector<1x32xf32>
    %126 = math.tanh %125 : vector<1x32xf32>
    %127 = arith.mulf %117, %126 : vector<1x32xf32>
    %cst_32 = arith.constant dense<0.000000e+00> : vector<1x128xf32>
    %128 = tpu.matmul %127, %2, %cst_32 {dimension_numbers = #tpu.dot_dimension_numbers<[1], [0], [0], [1], [0, 0, 1, 1], [], []>} : vector<1x32xf32>, vector<32x128xf32>, vector<1x128xf32> -> vector<1x128xf32>
    %129 = arith.addf %106, %128 : vector<1x128xf32>
    %130 = arith.negf %129 : vector<1x128xf32>
    %131 = math.exp %130 : vector<1x128xf32>
    %cst_33 = arith.constant 1.000000e+00 : f32
    %132 = vector.broadcast %cst_33 : f32 to vector<1x128xf32>
    %133 = arith.addf %132, %131 : vector<1x128xf32>
    %134 = arith.divf %132, %133 : vector<1x128xf32>
    %135 = vector.extract_strided_slice %134 {offsets = [0, 0], sizes = [1, 32], strides = [1, 1]} : vector<1x128xf32> to vector<1x32xf32>
    %136 = vector.extract_strided_slice %134 {offsets = [0, 32], sizes = [1, 32], strides = [1, 1]} : vector<1x128xf32> to vector<1x32xf32>
    %137 = vector.extract_strided_slice %134 {offsets = [0, 96], sizes = [1, 32], strides = [1, 1]} : vector<1x128xf32> to vector<1x32xf32>
    %138 = vector.extract_strided_slice %134 {offsets = [0, 64], sizes = [1, 32], strides = [1, 1]} : vector<1x128xf32> to vector<1x32xf32>
    %cst_34 = arith.constant 2.000000e+00 : f32
    %139 = vector.broadcast %cst_34 : f32 to vector<1x32xf32>
    %140 = arith.mulf %139, %138 : vector<1x32xf32>
    %cst_35 = arith.constant 1.000000e+00 : f32
    %141 = vector.broadcast %cst_35 : f32 to vector<1x32xf32>
    %142 = arith.subf %140, %141 : vector<1x32xf32>
    %143 = arith.mulf %136, %102 : vector<1x32xf32>
    %144 = arith.mulf %135, %142 : vector<1x32xf32>
    %145 = arith.addf %143, %144 : vector<1x32xf32>
    %146 = math.tanh %145 : vector<1x32xf32>
    %147 = arith.mulf %137, %146 : vector<1x32xf32>
    %cst_36 = arith.constant dense<0.000000e+00> : vector<1x128xf32>
    %148 = tpu.matmul %147, %3, %cst_36 {dimension_numbers = #tpu.dot_dimension_numbers<[1], [0], [0], [1], [0, 0, 1, 1], [], []>} : vector<1x32xf32>, vector<32x128xf32>, vector<1x128xf32> -> vector<1x128xf32>
    %149 = arith.addf %148, %7 : vector<1x128xf32>
    %150 = vector.extract_strided_slice %17 {offsets = [3, 0], sizes = [1, 128], strides = [1, 1]} : vector<8x128xf32> to vector<1x128xf32>
    %cst_37 = arith.constant dense<0.000000e+00> : vector<1x128xf32>
    %151 = tpu.matmul %127, %1, %cst_37 {dimension_numbers = #tpu.dot_dimension_numbers<[1], [0], [0], [1], [0, 0, 1, 1], [], []>} : vector<1x32xf32>, vector<32x128xf32>, vector<1x128xf32> -> vector<1x128xf32>
    %152 = arith.addf %150, %151 : vector<1x128xf32>
    %153 = arith.negf %152 : vector<1x128xf32>
    %154 = math.exp %153 : vector<1x128xf32>
    %cst_38 = arith.constant 1.000000e+00 : f32
    %155 = vector.broadcast %cst_38 : f32 to vector<1x128xf32>
    %156 = arith.addf %155, %154 : vector<1x128xf32>
    %157 = arith.divf %155, %156 : vector<1x128xf32>
    %158 = vector.extract_strided_slice %157 {offsets = [0, 0], sizes = [1, 32], strides = [1, 1]} : vector<1x128xf32> to vector<1x32xf32>
    %159 = vector.extract_strided_slice %157 {offsets = [0, 32], sizes = [1, 32], strides = [1, 1]} : vector<1x128xf32> to vector<1x32xf32>
    %160 = vector.extract_strided_slice %157 {offsets = [0, 96], sizes = [1, 32], strides = [1, 1]} : vector<1x128xf32> to vector<1x32xf32>
    %161 = vector.extract_strided_slice %157 {offsets = [0, 64], sizes = [1, 32], strides = [1, 1]} : vector<1x128xf32> to vector<1x32xf32>
    %cst_39 = arith.constant 2.000000e+00 : f32
    %162 = vector.broadcast %cst_39 : f32 to vector<1x32xf32>
    %163 = arith.mulf %162, %161 : vector<1x32xf32>
    %cst_40 = arith.constant 1.000000e+00 : f32
    %164 = vector.broadcast %cst_40 : f32 to vector<1x32xf32>
    %165 = arith.subf %163, %164 : vector<1x32xf32>
    %166 = arith.mulf %159, %125 : vector<1x32xf32>
    %167 = arith.mulf %158, %165 : vector<1x32xf32>
    %168 = arith.addf %166, %167 : vector<1x32xf32>
    %169 = math.tanh %168 : vector<1x32xf32>
    %170 = arith.mulf %160, %169 : vector<1x32xf32>
    %cst_41 = arith.constant dense<0.000000e+00> : vector<1x128xf32>
    %171 = tpu.matmul %170, %2, %cst_41 {dimension_numbers = #tpu.dot_dimension_numbers<[1], [0], [0], [1], [0, 0, 1, 1], [], []>} : vector<1x32xf32>, vector<32x128xf32>, vector<1x128xf32> -> vector<1x128xf32>
    %172 = arith.addf %149, %171 : vector<1x128xf32>
    %173 = arith.negf %172 : vector<1x128xf32>
    %174 = math.exp %173 : vector<1x128xf32>
    %cst_42 = arith.constant 1.000000e+00 : f32
    %175 = vector.broadcast %cst_42 : f32 to vector<1x128xf32>
    %176 = arith.addf %175, %174 : vector<1x128xf32>
    %177 = arith.divf %175, %176 : vector<1x128xf32>
    %178 = vector.extract_strided_slice %177 {offsets = [0, 0], sizes = [1, 32], strides = [1, 1]} : vector<1x128xf32> to vector<1x32xf32>
    %179 = vector.extract_strided_slice %177 {offsets = [0, 32], sizes = [1, 32], strides = [1, 1]} : vector<1x128xf32> to vector<1x32xf32>
    %180 = vector.extract_strided_slice %177 {offsets = [0, 96], sizes = [1, 32], strides = [1, 1]} : vector<1x128xf32> to vector<1x32xf32>
    %181 = vector.extract_strided_slice %177 {offsets = [0, 64], sizes = [1, 32], strides = [1, 1]} : vector<1x128xf32> to vector<1x32xf32>
    %cst_43 = arith.constant 2.000000e+00 : f32
    %182 = vector.broadcast %cst_43 : f32 to vector<1x32xf32>
    %183 = arith.mulf %182, %181 : vector<1x32xf32>
    %cst_44 = arith.constant 1.000000e+00 : f32
    %184 = vector.broadcast %cst_44 : f32 to vector<1x32xf32>
    %185 = arith.subf %183, %184 : vector<1x32xf32>
    %186 = arith.mulf %179, %145 : vector<1x32xf32>
    %187 = arith.mulf %178, %185 : vector<1x32xf32>
    %188 = arith.addf %186, %187 : vector<1x32xf32>
    %189 = math.tanh %188 : vector<1x32xf32>
    %190 = arith.mulf %180, %189 : vector<1x32xf32>
    %cst_45 = arith.constant dense<0.000000e+00> : vector<1x128xf32>
    %191 = tpu.matmul %190, %3, %cst_45 {dimension_numbers = #tpu.dot_dimension_numbers<[1], [0], [0], [1], [0, 0, 1, 1], [], []>} : vector<1x32xf32>, vector<32x128xf32>, vector<1x128xf32> -> vector<1x128xf32>
    %192 = arith.addf %191, %7 : vector<1x128xf32>
    %193 = vector.extract_strided_slice %17 {offsets = [4, 0], sizes = [1, 128], strides = [1, 1]} : vector<8x128xf32> to vector<1x128xf32>
    %cst_46 = arith.constant dense<0.000000e+00> : vector<1x128xf32>
    %194 = tpu.matmul %170, %1, %cst_46 {dimension_numbers = #tpu.dot_dimension_numbers<[1], [0], [0], [1], [0, 0, 1, 1], [], []>} : vector<1x32xf32>, vector<32x128xf32>, vector<1x128xf32> -> vector<1x128xf32>
    %195 = arith.addf %193, %194 : vector<1x128xf32>
    %196 = arith.negf %195 : vector<1x128xf32>
    %197 = math.exp %196 : vector<1x128xf32>
    %cst_47 = arith.constant 1.000000e+00 : f32
    %198 = vector.broadcast %cst_47 : f32 to vector<1x128xf32>
    %199 = arith.addf %198, %197 : vector<1x128xf32>
    %200 = arith.divf %198, %199 : vector<1x128xf32>
    %201 = vector.extract_strided_slice %200 {offsets = [0, 0], sizes = [1, 32], strides = [1, 1]} : vector<1x128xf32> to vector<1x32xf32>
    %202 = vector.extract_strided_slice %200 {offsets = [0, 32], sizes = [1, 32], strides = [1, 1]} : vector<1x128xf32> to vector<1x32xf32>
    %203 = vector.extract_strided_slice %200 {offsets = [0, 96], sizes = [1, 32], strides = [1, 1]} : vector<1x128xf32> to vector<1x32xf32>
    %204 = vector.extract_strided_slice %200 {offsets = [0, 64], sizes = [1, 32], strides = [1, 1]} : vector<1x128xf32> to vector<1x32xf32>
    %cst_48 = arith.constant 2.000000e+00 : f32
    %205 = vector.broadcast %cst_48 : f32 to vector<1x32xf32>
    %206 = arith.mulf %205, %204 : vector<1x32xf32>
    %cst_49 = arith.constant 1.000000e+00 : f32
    %207 = vector.broadcast %cst_49 : f32 to vector<1x32xf32>
    %208 = arith.subf %206, %207 : vector<1x32xf32>
    %209 = arith.mulf %202, %168 : vector<1x32xf32>
    %210 = arith.mulf %201, %208 : vector<1x32xf32>
    %211 = arith.addf %209, %210 : vector<1x32xf32>
    %212 = math.tanh %211 : vector<1x32xf32>
    %213 = arith.mulf %203, %212 : vector<1x32xf32>
    %cst_50 = arith.constant dense<0.000000e+00> : vector<1x128xf32>
    %214 = tpu.matmul %213, %2, %cst_50 {dimension_numbers = #tpu.dot_dimension_numbers<[1], [0], [0], [1], [0, 0, 1, 1], [], []>} : vector<1x32xf32>, vector<32x128xf32>, vector<1x128xf32> -> vector<1x128xf32>
    %215 = arith.addf %192, %214 : vector<1x128xf32>
    %216 = arith.negf %215 : vector<1x128xf32>
    %217 = math.exp %216 : vector<1x128xf32>
    %cst_51 = arith.constant 1.000000e+00 : f32
    %218 = vector.broadcast %cst_51 : f32 to vector<1x128xf32>
    %219 = arith.addf %218, %217 : vector<1x128xf32>
    %220 = arith.divf %218, %219 : vector<1x128xf32>
    %221 = vector.extract_strided_slice %220 {offsets = [0, 0], sizes = [1, 32], strides = [1, 1]} : vector<1x128xf32> to vector<1x32xf32>
    %222 = vector.extract_strided_slice %220 {offsets = [0, 32], sizes = [1, 32], strides = [1, 1]} : vector<1x128xf32> to vector<1x32xf32>
    %223 = vector.extract_strided_slice %220 {offsets = [0, 96], sizes = [1, 32], strides = [1, 1]} : vector<1x128xf32> to vector<1x32xf32>
    %224 = vector.extract_strided_slice %220 {offsets = [0, 64], sizes = [1, 32], strides = [1, 1]} : vector<1x128xf32> to vector<1x32xf32>
    %cst_52 = arith.constant 2.000000e+00 : f32
    %225 = vector.broadcast %cst_52 : f32 to vector<1x32xf32>
    %226 = arith.mulf %225, %224 : vector<1x32xf32>
    %cst_53 = arith.constant 1.000000e+00 : f32
    %227 = vector.broadcast %cst_53 : f32 to vector<1x32xf32>
    %228 = arith.subf %226, %227 : vector<1x32xf32>
    %229 = arith.mulf %222, %188 : vector<1x32xf32>
    %230 = arith.mulf %221, %228 : vector<1x32xf32>
    %231 = arith.addf %229, %230 : vector<1x32xf32>
    %232 = math.tanh %231 : vector<1x32xf32>
    %233 = arith.mulf %223, %232 : vector<1x32xf32>
    %cst_54 = arith.constant dense<0.000000e+00> : vector<1x128xf32>
    %234 = tpu.matmul %233, %3, %cst_54 {dimension_numbers = #tpu.dot_dimension_numbers<[1], [0], [0], [1], [0, 0, 1, 1], [], []>} : vector<1x32xf32>, vector<32x128xf32>, vector<1x128xf32> -> vector<1x128xf32>
    %235 = arith.addf %234, %7 : vector<1x128xf32>
    %236 = vector.extract_strided_slice %17 {offsets = [5, 0], sizes = [1, 128], strides = [1, 1]} : vector<8x128xf32> to vector<1x128xf32>
    %cst_55 = arith.constant dense<0.000000e+00> : vector<1x128xf32>
    %237 = tpu.matmul %213, %1, %cst_55 {dimension_numbers = #tpu.dot_dimension_numbers<[1], [0], [0], [1], [0, 0, 1, 1], [], []>} : vector<1x32xf32>, vector<32x128xf32>, vector<1x128xf32> -> vector<1x128xf32>
    %238 = arith.addf %236, %237 : vector<1x128xf32>
    %239 = arith.negf %238 : vector<1x128xf32>
    %240 = math.exp %239 : vector<1x128xf32>
    %cst_56 = arith.constant 1.000000e+00 : f32
    %241 = vector.broadcast %cst_56 : f32 to vector<1x128xf32>
    %242 = arith.addf %241, %240 : vector<1x128xf32>
    %243 = arith.divf %241, %242 : vector<1x128xf32>
    %244 = vector.extract_strided_slice %243 {offsets = [0, 0], sizes = [1, 32], strides = [1, 1]} : vector<1x128xf32> to vector<1x32xf32>
    %245 = vector.extract_strided_slice %243 {offsets = [0, 32], sizes = [1, 32], strides = [1, 1]} : vector<1x128xf32> to vector<1x32xf32>
    %246 = vector.extract_strided_slice %243 {offsets = [0, 96], sizes = [1, 32], strides = [1, 1]} : vector<1x128xf32> to vector<1x32xf32>
    %247 = vector.extract_strided_slice %243 {offsets = [0, 64], sizes = [1, 32], strides = [1, 1]} : vector<1x128xf32> to vector<1x32xf32>
    %cst_57 = arith.constant 2.000000e+00 : f32
    %248 = vector.broadcast %cst_57 : f32 to vector<1x32xf32>
    %249 = arith.mulf %248, %247 : vector<1x32xf32>
    %cst_58 = arith.constant 1.000000e+00 : f32
    %250 = vector.broadcast %cst_58 : f32 to vector<1x32xf32>
    %251 = arith.subf %249, %250 : vector<1x32xf32>
    %252 = arith.mulf %245, %211 : vector<1x32xf32>
    %253 = arith.mulf %244, %251 : vector<1x32xf32>
    %254 = arith.addf %252, %253 : vector<1x32xf32>
    %255 = math.tanh %254 : vector<1x32xf32>
    %256 = arith.mulf %246, %255 : vector<1x32xf32>
    %cst_59 = arith.constant dense<0.000000e+00> : vector<1x128xf32>
    %257 = tpu.matmul %256, %2, %cst_59 {dimension_numbers = #tpu.dot_dimension_numbers<[1], [0], [0], [1], [0, 0, 1, 1], [], []>} : vector<1x32xf32>, vector<32x128xf32>, vector<1x128xf32> -> vector<1x128xf32>
    %258 = arith.addf %235, %257 : vector<1x128xf32>
    %259 = arith.negf %258 : vector<1x128xf32>
    %260 = math.exp %259 : vector<1x128xf32>
    %cst_60 = arith.constant 1.000000e+00 : f32
    %261 = vector.broadcast %cst_60 : f32 to vector<1x128xf32>
    %262 = arith.addf %261, %260 : vector<1x128xf32>
    %263 = arith.divf %261, %262 : vector<1x128xf32>
    %264 = vector.extract_strided_slice %263 {offsets = [0, 0], sizes = [1, 32], strides = [1, 1]} : vector<1x128xf32> to vector<1x32xf32>
    %265 = vector.extract_strided_slice %263 {offsets = [0, 32], sizes = [1, 32], strides = [1, 1]} : vector<1x128xf32> to vector<1x32xf32>
    %266 = vector.extract_strided_slice %263 {offsets = [0, 96], sizes = [1, 32], strides = [1, 1]} : vector<1x128xf32> to vector<1x32xf32>
    %267 = vector.extract_strided_slice %263 {offsets = [0, 64], sizes = [1, 32], strides = [1, 1]} : vector<1x128xf32> to vector<1x32xf32>
    %cst_61 = arith.constant 2.000000e+00 : f32
    %268 = vector.broadcast %cst_61 : f32 to vector<1x32xf32>
    %269 = arith.mulf %268, %267 : vector<1x32xf32>
    %cst_62 = arith.constant 1.000000e+00 : f32
    %270 = vector.broadcast %cst_62 : f32 to vector<1x32xf32>
    %271 = arith.subf %269, %270 : vector<1x32xf32>
    %272 = arith.mulf %265, %231 : vector<1x32xf32>
    %273 = arith.mulf %264, %271 : vector<1x32xf32>
    %274 = arith.addf %272, %273 : vector<1x32xf32>
    %275 = math.tanh %274 : vector<1x32xf32>
    %276 = arith.mulf %266, %275 : vector<1x32xf32>
    %cst_63 = arith.constant dense<0.000000e+00> : vector<1x128xf32>
    %277 = tpu.matmul %276, %3, %cst_63 {dimension_numbers = #tpu.dot_dimension_numbers<[1], [0], [0], [1], [0, 0, 1, 1], [], []>} : vector<1x32xf32>, vector<32x128xf32>, vector<1x128xf32> -> vector<1x128xf32>
    %278 = arith.addf %277, %7 : vector<1x128xf32>
    %279 = vector.extract_strided_slice %17 {offsets = [6, 0], sizes = [1, 128], strides = [1, 1]} : vector<8x128xf32> to vector<1x128xf32>
    %cst_64 = arith.constant dense<0.000000e+00> : vector<1x128xf32>
    %280 = tpu.matmul %256, %1, %cst_64 {dimension_numbers = #tpu.dot_dimension_numbers<[1], [0], [0], [1], [0, 0, 1, 1], [], []>} : vector<1x32xf32>, vector<32x128xf32>, vector<1x128xf32> -> vector<1x128xf32>
    %281 = arith.addf %279, %280 : vector<1x128xf32>
    %282 = arith.negf %281 : vector<1x128xf32>
    %283 = math.exp %282 : vector<1x128xf32>
    %cst_65 = arith.constant 1.000000e+00 : f32
    %284 = vector.broadcast %cst_65 : f32 to vector<1x128xf32>
    %285 = arith.addf %284, %283 : vector<1x128xf32>
    %286 = arith.divf %284, %285 : vector<1x128xf32>
    %287 = vector.extract_strided_slice %286 {offsets = [0, 0], sizes = [1, 32], strides = [1, 1]} : vector<1x128xf32> to vector<1x32xf32>
    %288 = vector.extract_strided_slice %286 {offsets = [0, 32], sizes = [1, 32], strides = [1, 1]} : vector<1x128xf32> to vector<1x32xf32>
    %289 = vector.extract_strided_slice %286 {offsets = [0, 96], sizes = [1, 32], strides = [1, 1]} : vector<1x128xf32> to vector<1x32xf32>
    %290 = vector.extract_strided_slice %286 {offsets = [0, 64], sizes = [1, 32], strides = [1, 1]} : vector<1x128xf32> to vector<1x32xf32>
    %cst_66 = arith.constant 2.000000e+00 : f32
    %291 = vector.broadcast %cst_66 : f32 to vector<1x32xf32>
    %292 = arith.mulf %291, %290 : vector<1x32xf32>
    %cst_67 = arith.constant 1.000000e+00 : f32
    %293 = vector.broadcast %cst_67 : f32 to vector<1x32xf32>
    %294 = arith.subf %292, %293 : vector<1x32xf32>
    %295 = arith.mulf %288, %254 : vector<1x32xf32>
    %296 = arith.mulf %287, %294 : vector<1x32xf32>
    %297 = arith.addf %295, %296 : vector<1x32xf32>
    %298 = math.tanh %297 : vector<1x32xf32>
    %299 = arith.mulf %289, %298 : vector<1x32xf32>
    %cst_68 = arith.constant dense<0.000000e+00> : vector<1x128xf32>
    %300 = tpu.matmul %299, %2, %cst_68 {dimension_numbers = #tpu.dot_dimension_numbers<[1], [0], [0], [1], [0, 0, 1, 1], [], []>} : vector<1x32xf32>, vector<32x128xf32>, vector<1x128xf32> -> vector<1x128xf32>
    %301 = arith.addf %278, %300 : vector<1x128xf32>
    %302 = arith.negf %301 : vector<1x128xf32>
    %303 = math.exp %302 : vector<1x128xf32>
    %cst_69 = arith.constant 1.000000e+00 : f32
    %304 = vector.broadcast %cst_69 : f32 to vector<1x128xf32>
    %305 = arith.addf %304, %303 : vector<1x128xf32>
    %306 = arith.divf %304, %305 : vector<1x128xf32>
    %307 = vector.extract_strided_slice %306 {offsets = [0, 0], sizes = [1, 32], strides = [1, 1]} : vector<1x128xf32> to vector<1x32xf32>
    %308 = vector.extract_strided_slice %306 {offsets = [0, 32], sizes = [1, 32], strides = [1, 1]} : vector<1x128xf32> to vector<1x32xf32>
    %309 = vector.extract_strided_slice %306 {offsets = [0, 96], sizes = [1, 32], strides = [1, 1]} : vector<1x128xf32> to vector<1x32xf32>
    %310 = vector.extract_strided_slice %306 {offsets = [0, 64], sizes = [1, 32], strides = [1, 1]} : vector<1x128xf32> to vector<1x32xf32>
    %cst_70 = arith.constant 2.000000e+00 : f32
    %311 = vector.broadcast %cst_70 : f32 to vector<1x32xf32>
    %312 = arith.mulf %311, %310 : vector<1x32xf32>
    %cst_71 = arith.constant 1.000000e+00 : f32
    %313 = vector.broadcast %cst_71 : f32 to vector<1x32xf32>
    %314 = arith.subf %312, %313 : vector<1x32xf32>
    %315 = arith.mulf %308, %274 : vector<1x32xf32>
    %316 = arith.mulf %307, %314 : vector<1x32xf32>
    %317 = arith.addf %315, %316 : vector<1x32xf32>
    %318 = math.tanh %317 : vector<1x32xf32>
    %319 = arith.mulf %309, %318 : vector<1x32xf32>
    %cst_72 = arith.constant dense<0.000000e+00> : vector<1x128xf32>
    %320 = tpu.matmul %319, %3, %cst_72 {dimension_numbers = #tpu.dot_dimension_numbers<[1], [0], [0], [1], [0, 0, 1, 1], [], []>} : vector<1x32xf32>, vector<32x128xf32>, vector<1x128xf32> -> vector<1x128xf32>
    %321 = arith.addf %320, %7 : vector<1x128xf32>
    %322 = vector.extract_strided_slice %17 {offsets = [7, 0], sizes = [1, 128], strides = [1, 1]} : vector<8x128xf32> to vector<1x128xf32>
    %cst_73 = arith.constant dense<0.000000e+00> : vector<1x128xf32>
    %323 = tpu.matmul %299, %1, %cst_73 {dimension_numbers = #tpu.dot_dimension_numbers<[1], [0], [0], [1], [0, 0, 1, 1], [], []>} : vector<1x32xf32>, vector<32x128xf32>, vector<1x128xf32> -> vector<1x128xf32>
    %324 = arith.addf %322, %323 : vector<1x128xf32>
    %325 = arith.negf %324 : vector<1x128xf32>
    %326 = math.exp %325 : vector<1x128xf32>
    %cst_74 = arith.constant 1.000000e+00 : f32
    %327 = vector.broadcast %cst_74 : f32 to vector<1x128xf32>
    %328 = arith.addf %327, %326 : vector<1x128xf32>
    %329 = arith.divf %327, %328 : vector<1x128xf32>
    %330 = vector.extract_strided_slice %329 {offsets = [0, 0], sizes = [1, 32], strides = [1, 1]} : vector<1x128xf32> to vector<1x32xf32>
    %331 = vector.extract_strided_slice %329 {offsets = [0, 32], sizes = [1, 32], strides = [1, 1]} : vector<1x128xf32> to vector<1x32xf32>
    %332 = vector.extract_strided_slice %329 {offsets = [0, 96], sizes = [1, 32], strides = [1, 1]} : vector<1x128xf32> to vector<1x32xf32>
    %333 = vector.extract_strided_slice %329 {offsets = [0, 64], sizes = [1, 32], strides = [1, 1]} : vector<1x128xf32> to vector<1x32xf32>
    %cst_75 = arith.constant 2.000000e+00 : f32
    %334 = vector.broadcast %cst_75 : f32 to vector<1x32xf32>
    %335 = arith.mulf %334, %333 : vector<1x32xf32>
    %cst_76 = arith.constant 1.000000e+00 : f32
    %336 = vector.broadcast %cst_76 : f32 to vector<1x32xf32>
    %337 = arith.subf %335, %336 : vector<1x32xf32>
    %338 = arith.mulf %331, %297 : vector<1x32xf32>
    %339 = arith.mulf %330, %337 : vector<1x32xf32>
    %340 = arith.addf %338, %339 : vector<1x32xf32>
    %341 = math.tanh %340 : vector<1x32xf32>
    %342 = arith.mulf %332, %341 : vector<1x32xf32>
    %cst_77 = arith.constant dense<0.000000e+00> : vector<1x128xf32>
    %343 = tpu.matmul %342, %2, %cst_77 {dimension_numbers = #tpu.dot_dimension_numbers<[1], [0], [0], [1], [0, 0, 1, 1], [], []>} : vector<1x32xf32>, vector<32x128xf32>, vector<1x128xf32> -> vector<1x128xf32>
    %344 = arith.addf %321, %343 : vector<1x128xf32>
    %345 = arith.negf %344 : vector<1x128xf32>
    %346 = math.exp %345 : vector<1x128xf32>
    %cst_78 = arith.constant 1.000000e+00 : f32
    %347 = vector.broadcast %cst_78 : f32 to vector<1x128xf32>
    %348 = arith.addf %347, %346 : vector<1x128xf32>
    %349 = arith.divf %347, %348 : vector<1x128xf32>
    %350 = vector.extract_strided_slice %349 {offsets = [0, 0], sizes = [1, 32], strides = [1, 1]} : vector<1x128xf32> to vector<1x32xf32>
    %351 = vector.extract_strided_slice %349 {offsets = [0, 32], sizes = [1, 32], strides = [1, 1]} : vector<1x128xf32> to vector<1x32xf32>
    %352 = vector.extract_strided_slice %349 {offsets = [0, 96], sizes = [1, 32], strides = [1, 1]} : vector<1x128xf32> to vector<1x32xf32>
    %353 = vector.extract_strided_slice %349 {offsets = [0, 64], sizes = [1, 32], strides = [1, 1]} : vector<1x128xf32> to vector<1x32xf32>
    %cst_79 = arith.constant 2.000000e+00 : f32
    %354 = vector.broadcast %cst_79 : f32 to vector<1x32xf32>
    %355 = arith.mulf %354, %353 : vector<1x32xf32>
    %cst_80 = arith.constant 1.000000e+00 : f32
    %356 = vector.broadcast %cst_80 : f32 to vector<1x32xf32>
    %357 = arith.subf %355, %356 : vector<1x32xf32>
    %358 = arith.mulf %351, %317 : vector<1x32xf32>
    %359 = arith.mulf %350, %357 : vector<1x32xf32>
    %360 = arith.addf %358, %359 : vector<1x32xf32>
    %361 = math.tanh %360 : vector<1x32xf32>
    %362 = arith.mulf %352, %361 : vector<1x32xf32>
    %363 = tpu.concatenate %61, %104, %147, %190, %233, %276, %319, %362 in 0 : vector<1x32xf32>, vector<1x32xf32>, vector<1x32xf32>, vector<1x32xf32>, vector<1x32xf32>, vector<1x32xf32>, vector<1x32xf32>, vector<1x32xf32> -> vector<8x32xf32>
    %cst_81 = arith.constant dense<0.000000e+00> : vector<8x128xf32>
    %364 = tpu.matmul %363, %4, %cst_81 {dimension_numbers = #tpu.dot_dimension_numbers<[1], [0], [0], [1], [0, 0, 1, 1], [], []>} : vector<8x32xf32>, vector<32x128xf32>, vector<8x128xf32> -> vector<8x128xf32>
    %365 = vector.broadcast %8 : vector<1x128xf32> to vector<8x128xf32>
    %366 = arith.addf %364, %365 : vector<8x128xf32>
    %367 = vector.extract_strided_slice %366 {offsets = [0, 0], sizes = [8, 8], strides = [1, 1]} : vector<8x128xf32> to vector<8x8xf32>
    %cst_82 = arith.constant dense<0xFF800000> : vector<8xf32>
    %368 = vector.multi_reduction <maximumf>, %367, %cst_82 [1] : vector<8x8xf32> to vector<8xf32>
    %369 = vector.shape_cast %368 : vector<8xf32> to vector<8x1xf32>
    %370 = vector.broadcast %369 : vector<8x1xf32> to vector<8x8xf32>
    %371 = arith.subf %367, %370 : vector<8x8xf32>
    %372 = math.exp %371 : vector<8x8xf32>
    %cst_83 = arith.constant dense<0.000000e+00> : vector<8xf32>
    %373 = vector.multi_reduction <add>, %372, %cst_83 [1] : vector<8x8xf32> to vector<8xf32>
    %374 = vector.shape_cast %373 : vector<8xf32> to vector<8x1xf32>
    %375 = math.log %374 : vector<8x1xf32>
    %376 = arith.addf %369, %375 : vector<8x1xf32>
    %377 = vector.broadcast %376 : vector<8x1xf32> to vector<8x8xf32>
    %378 = arith.subf %367, %377 : vector<8x8xf32>
    %c0_84 = arith.constant 0 : index
    %c0_85 = arith.constant 0 : index
    %379 = vector.load %arg2[%c0_84, %c0_85] : memref<8x8xf32, #tpu.memory_space<vmem>>, vector<8x8xf32>
    tpu.vector_store %arg2[%c0_84, %c0_85], %378 {strides = array<i32>} : memref<8x8xf32, #tpu.memory_space<vmem>>, vector<8x8xf32>,
    return
  }
}

</mosaic_0001>

<bundles_post_ra>
// kernel: tpu_custom_call.1
= control target key start
LH: loop header
LB: loop body
LE: loop exit
PB: predicated region body
PF: predicated region fallthrough
CT: control target
= control target key end

     0   :  { %7 = vsyncpa [#allocation3], 0  ;;  %s3648_s0 = inlined_call_operand.vmem [shape: s32[8,1], index: 0, kind: input, shape index: {}]   ;;  %s3649_s1 = inlined_call_operand.hbm [shape: f32[160,128], index: 1, kind: input, shape index: {}]   ;;  %s3650_s2 = inlined_call_operand.hbm [shape: f32[8,8], index: 2, kind: output, shape index: {}]  }
   0x1   :  { %8 = vsyncpa [#allocation4], 0  ;;  %s3131_s9 = smov [#allocation2]  }
   0x2   :  { %s16_s10 = sshll.u32 %s3131_s9, 4  ;;  %s17_s10 = int_to_ptr.vmem [resolvable:$true] %s16_s10 }
   0x3   :  { %s3095_s11 = scalar_lea.vmem %s17_s10, 2560  ;;  %p3100_p1 = scmp.lt.s32.totalorder %s17_s10, %s17_s10 }
   0x4   :  { %p3096_p0 = scmp.ne.s32.totalorder %s17_s10, %s3095_s11  ;;  %p3101_p2 = scmp.lt.s32.totalorder %s3095_s11, %s3095_s11 }
   0x6   :  { %p3102_p3 = por %p3101_p2, %p3100_p1 }
   0x8   :  { %p3103_p4 = pnand %p3102_p3, %p3096_p0 }
   0xa   :  { %3106 = shalt.err (!%p3103_p4)
}
   0xb   :  { %s3132_s12 = smov 128   ;;  %s3133_s13 = smov 8  }
   0xc   :  { %22 = dma.hbm_to_vmem [thread:$0]  %s3649_s1, 2560, %s17_s10, [#allocation3], %s3132_s12, %s3132_s12, %s3133_s13  }
   0xd   :  { %3127 = dma.done.wait [#allocation3], 2560  }
   0xe   :  { %3128 = vsyncadd [#allocation3], 4294964736  ;;  %v3134_v0 = vmov 0   ;;  %v3135_v1 = vmov 0.0   ;;  %vm3136_vm0 = vmmov 0   ;;  %v46_v2 = vld [vmem:[%s3648_s0] sm:$0xff]  ;;  %v47_v6 = vlaneseq }
   0xf   :  { %2977 = vset.pattern.permute.xlu0 %v3134_v0  ;;  %2684 = vmatprep.subr.mxu0 %v3135_v1  ;;  %v28_v3 = vld [vmem:[#allocation2 + $0x10] sm:$0xff]  ;;  %v27_v4 = vld [vmem:[#allocation2 + $0x8] sm:$0xff]  ;;  %v26_v5 = vld [vmem:[#allocation2] sm:$0xff]  ;;  %vm59_vm1 = vcmask 195584   ;;  %s3137_s0 = smov 64   ;;  %s3138_s1 = smov 32  }
  0x10   :  { %2693 = vmatprep.subr.mxu1 %v3135_v1  ;;  %2690 = vmatprep.mubr.msk.f32.mxu0 %vm3136_vm0, %v3135_v1  ;;  %v48_v7 = vand.u32 127, %v47_v6  ;;  %v3170_v9 = vld [vmem:[#allocation2 + $0x30] sm:$0xff]  ;;  %v3173_v11 = vld [vmem:[#allocation2 + $0x28] sm:$0xff]  ;;  %v3179_v12 = vld [vmem:[#allocation2 + $0x20] sm:$0xff]  ;;  %v3192_v14 = vshrl.u32 %v47_v6, 7  ;;  %vm136_vm3 = vcmask 261120  }
  0x11   :  { %2701 = vmatprep.mubr.msk.f32.mxu1 %vm3136_vm0, %v3135_v1  ;;  %50 = vperm.xlu0 %2977, %v46_v2   ;;  %v3183_v13 = vld [vmem:[#allocation2 + $0x18] sm:$0xff]  ;;  %v3206_v35 = vld [vmem:[#allocation2 + $0x70] sm:$0xff]  ;;  %v3208_v36 = vld [vmem:[#allocation2 + $0x68] sm:$0xff]  ;;  %vm2375_vm4 = vcmask 1040384   ;;  %vm2377_vm5 = vcmask 1041408   ;;  %vm2379_vm6 = vcmask 1042432  }
  0x12   :  { %2685 = vmatpush3.msra.mxu0 %v28_v3  ;;  %v57_v15 = vsub.s32 0, %v3192_v14  ;;  %v3195_v16 = vld [vmem:[#allocation2 + $0x98] sm:$0xff]  ;;  %2694 = vmatpush3.msra.mxu1 %v3206_v35  ;;  %v3213_v37 = vld [vmem:[#allocation2 + $0x60] sm:$0xff]  ;;  %v3225_v39 = vld [vmem:[#allocation2 + $0x50] sm:$0xff]  ;;  %vm2381_vm7 = vcmask 1043456   ;;  %vm2383_vm8 = vcmask 1044480  }
  0x13   :  { %2686 = vmatprep.subr.mxu0 %v3135_v1  ;;  %2695 = vmatprep.subr.mxu1 %v3135_v1  ;;  %v3219_v38 = vld [vmem:[#allocation2 + $0x58] sm:$0xff]  ;;  %v3232_v40 = vld [vmem:[#allocation2 + $0x48] sm:$0xff]  ;;  %v3238_v42 = vld [vmem:[#allocation2 + $0x40] sm:$0xff]  ;;  %v3274_v49 = vrot.slane %v3195_v16, 1  ;;  %vm2385_vm9 = vcmask 1045504   ;;  %vm2387_vm10 = vcmask 1046528  }
  0x14   :  { %2687 = vmatpush3.msra.mxu0 %v27_v4  ;;  %v58_v19 = vrot.slane %v3195_v16, %v57_v15  ;;  %2696 = vmatpush3.msra.mxu1 %v3208_v36  ;;  %v3244_v43 = vld [vmem:[#allocation2 + $0x38] sm:$0xff]  ;;  %vm2468_vm11 = vcmask 64512   ;;  %s3139_s18 = smov [#allocation5]  }
  0x15   :  { %2688 = vmatprep.subr.mxu0 %v3135_v1  ;;  %2697 = vmatprep.subr.mxu1 %v3135_v1  ;;  %s2489_s19 = sshll.u32 %s3139_s18, 4  ;;  %s2490_s19 = int_to_ptr.vmem [resolvable:$true] %s2489_s19 }
  0x16   :  { %2689 = vmatpush3.msra.mxu0 %v26_v5  ;;  %2698 = vmatpush3.msra.mxu1 %v3213_v37  ;;  %s3107_s20 = scalar_lea.vmem %s2490_s19, 128  ;;  %p3112_p6 = scmp.lt.s32.totalorder %s2490_s19, %s2490_s19 }
  0x17   :  { %2704 = vmatprep.subr.mxu0 %v3135_v1  ;;  %2699 = vmatprep.subr.mxu1 %v3135_v1  ;;  %p3108_p5 = scmp.ne.s32.totalorder %s2490_s19, %s3107_s20  ;;  %p3113_p7 = scmp.lt.s32.totalorder %s3107_s20, %s3107_s20 }
  0x18   :  { %2700 = vmatpush3.msra.mxu1 %v3219_v38 }
  0x19   :  { %2702 = vmatmul.mubr.f32.vlgmr.msra.gmra.mxu1 %v3135_v1  ;;  %2715 = vmatprep.subr.mxu1 %v3135_v1  ;;  %p3114_p8 = por %p3113_p7, %p3112_p6 }
  0x1a   :  { %2716 = vmatpush3.msra.mxu1 %v3225_v39  ;;  %2723 = vmatprep.mubr.msk.f32.mxu1 %vm3136_vm0, %v3135_v1 }
  0x1b   :  { %2717 = vmatprep.subr.mxu1 %v3135_v1  ;;  %p3115_p9 = pnand %p3114_p8, %p3108_p5 }
  0x1c   :  { %2718 = vmatpush3.msra.mxu1 %v3232_v40 }
  0x1d   :  { %2719 = vmatprep.subr.mxu1 %v3135_v1 }
  0x1e   :  { %2720 = vmatpush3.msra.mxu1 %v3238_v42 }
  0x1f   :  { %2721 = vmatprep.subr.mxu1 %v3135_v1 }
  0x20   :  { %2722 = vmatpush3.msra.mxu1 %v3244_v43 }
  0x21   :  { %2737 = vmatprep.subr.mxu1 %v3135_v1 }
  0x8c   :  { %v51_v8 = vpop.permute.xlu0 %50 }
  0x8d   :  { %vm52_vm2 = vcmp.eq.s32.totalorder %v48_v7, %v51_v8 }
  0x8e   :  { %v2498_v10 = vsel %vm52_vm2, 1.0, %v3135_v1 }
  0x8f   :  { %2691 = vmatmul.mubr.msk.f32.vlgmr.msra.gmra.mxu0 %vm59_vm1, %v2498_v10 }
  0x90   :  { %2705 = vmatpush3.msra.mxu0 %v3170_v9  ;;  %2712 = vmatprep.mubr.msk.f32.mxu0 %vm3136_vm0, %v3135_v1 }
  0x91   :  { %2706 = vmatprep.subr.mxu0 %v3135_v1 }
  0x92   :  { %2707 = vmatpush3.msra.mxu0 %v3173_v11 }
  0x93   :  { %2708 = vmatprep.subr.mxu0 %v3135_v1 }
  0x94   :  { %2709 = vmatpush3.msra.mxu0 %v3179_v12 }
  0x95   :  { %2710 = vmatprep.subr.mxu0 %v3135_v1 }
  0x96   :  { %2711 = vmatpush3.msra.mxu0 %v3183_v13 }
  0x97   :  { %2713 = vmatmul.mubr.f32.vlgmr.msra.gmra.mxu0 %v3135_v1  ;;  %2726 = vmatprep.subr.mxu0 %v3135_v1 }
  0x98   :  { %2734 = vmatprep.mubr.msk.f32.mxu0 %vm3136_vm0, %v3135_v1  ;;  %2727 = vmatpush3.msra.mxu0 %v3206_v35 }
  0x99   :  { %2728 = vmatprep.subr.mxu0 %v3135_v1 }
  0x9a   :  { %2729 = vmatpush3.msra.mxu0 %v3208_v36 }
  0x9b   :  { %2730 = vmatprep.subr.mxu0 %v3135_v1 }
  0x9c   :  { %2731 = vmatpush3.msra.mxu0 %v3213_v37 }
  0x9d   :  { %2732 = vmatprep.subr.mxu0 %v3135_v1 }
  0x9e   :  { %2733 = vmatpush3.msra.mxu0 %v3219_v38 }
  0x9f   :  { %2748 = vmatprep.subr.mxu0 %v3135_v1 }
  0xd9   :  { %v206_v46 = vpop.f32.mrf.mxu1 }
  0xda   :  { %v207_v50 = vadd.f32 %v206_v46, %v3274_v49 }
  0xdb   :  { %v2703_v47 = vpop.f32.mrf.mxu1 }
 0x14f   :  { %v129_v17 = vpop.f32.mrf.mxu0 }
 0x150   :  { %v3198_v20 = vadd.f32 %v129_v17, %v58_v19 }
 0x151   :  { %v2692_v18 = vpop.f32.mrf.mxu0 }
 0x157   :  { %v276_v21 = vpop.f32.mrf.mxu0 }
 0x158   :  { %v280_v22 = vadd.f32 %v276_v21, %v3198_v20 }
 0x159   :  { %v2714_v23 = vpop.f32.mrf.mxu0 }
 0x15a   :  { %v2500_v24 = vmul.f32 -1.442695, %v280_v22 }
 0x15c   :  { %2978 = vpow2.f32 %v2500_v24 }
 0x169   :  { %v2979_v25 = vpop.eup %2978 }
 0x16a   :  { %v284_v26 = vadd.f32 1.0, %v2979_v25 }
 0x16c   :  { %2980 = vrcp.f32 %v284_v26 }
 0x179   :  { %v2981_v27 = vpop.eup %2980 }
 0x17a   :  { %v287_v28 = vmul.f32 2.0, %v2981_v27  ;;  %v289_v32 = vmul.f32 0.0, %v2981_v27 }
 0x17c   :  { %v2501_v29 = vadd.f32 -1.0, %v287_v28 }
 0x17e   :  { %291 = vrot.lane.b32.xlu0 %v2501_v29, %s3137_s0 }
 0x1f0   :  { %v292_v30 = vpop.permute.xlu0 %291 }
 0x1f1   :  { %v294_v31 = vmul.f32 %v2981_v27, %v292_v30 }
 0x1f3   :  { %296 = vrot.lane.b32.xlu1 %v294_v31, %s3138_s1 }
 0x265   :  { %v297_v33 = vpop.permute.xlu1 %296 }
 0x266   :  { %v3203_v34 = vadd.f32 %v297_v33, %v289_v32 }
 0x268   :  { %2982 = vtanh.f32 %v3203_v34  ;;  %v565_v19 = vrot.slane %v3203_v34, 7 }
 0x275   :  { %v2983_v41 = vpop.eup %2982 }
 0x276   :  { %302 = vrot.lane.b32.xlu1 %v2983_v41, %s3137_s0 }
 0x2e8   :  { %v303_v44 = vpop.permute.xlu1 %302 }
 0x2e9   :  { %v305_v45 = vmul.f32 %v2981_v27, %v303_v44 }
 0x2eb   :  { %307 = vrot.lane.b32.xlu0 %v305_v45, %s3138_s1 }
 0x35d   :  { %v308_v48 = vpop.permute.xlu0 %307 }
 0x35e   :  { %2724 = vmatmul.mubr.msk.f32.vlgmr.msra.gmra.mxu1 %vm136_vm3, %v308_v48 }
 0x35f   :  { %2738 = vmatpush3.msra.mxu1 %v3170_v9  ;;  %2745 = vmatprep.mubr.msk.f32.mxu1 %vm3136_vm0, %v3135_v1 }
 0x360   :  { %2739 = vmatprep.subr.mxu1 %v3135_v1 }
 0x361   :  { %2740 = vmatpush3.msra.mxu1 %v3173_v11 }
 0x362   :  { %2741 = vmatprep.subr.mxu1 %v3135_v1 }
 0x363   :  { %2742 = vmatpush3.msra.mxu1 %v3179_v12 }
 0x364   :  { %2743 = vmatprep.subr.mxu1 %v3135_v1 }
 0x365   :  { %2744 = vmatpush3.msra.mxu1 %v3183_v13 }
 0x366   :  { %2746 = vmatmul.mubr.msk.f32.vlgmr.msra.gmra.mxu1 %vm136_vm3, %v308_v48  ;;  %2759 = vmatprep.subr.mxu1 %v3135_v1 }
 0x367   :  { %2760 = vmatpush3.msra.mxu1 %v3206_v35  ;;  %2767 = vmatprep.mubr.msk.f32.mxu1 %vm3136_vm0, %v3135_v1 }
 0x368   :  { %2761 = vmatprep.subr.mxu1 %v3135_v1 }
 0x369   :  { %2762 = vmatpush3.msra.mxu1 %v3208_v36 }
 0x36a   :  { %2763 = vmatprep.subr.mxu1 %v3135_v1 }
 0x36b   :  { %2764 = vmatpush3.msra.mxu1 %v3213_v37 }
 0x36c   :  { %2765 = vmatprep.subr.mxu1 %v3135_v1 }
 0x36d   :  { %2766 = vmatpush3.msra.mxu1 %v3219_v38 }
 0x36e   :  { %2781 = vmatprep.subr.mxu1 %v3135_v1 }
 0x41e   :  { %v377_v51 = vpop.f32.mrf.mxu1 }
 0x41f   :  { %v381_v52 = vadd.f32 %v377_v51, %v207_v50 }
 0x420   :  { %v2725_v53 = vpop.f32.mrf.mxu1 }
 0x421   :  { %v2503_v54 = vmul.f32 -1.442695, %v381_v52 }
 0x423   :  { %2984 = vpow2.f32 %v2503_v54 }
 0x426   :  { %v548_v55 = vpop.f32.mrf.mxu1 }
 0x427   :  { %v553_v56 = vrot.slane %v548_v55, 7 }
 0x428   :  { %v2747_v57 = vpop.f32.mrf.mxu1 }
 0x429   :  { %v555_v58 = vadd.f32 %v553_v56, %v3198_v20 }
 0x42b   :  { %v2507_v59 = vmul.f32 -1.442695, %v555_v58 }
 0x42d   :  { %2986 = vpow2.f32 %v2507_v59 }
 0x430   :  { %v2985_v60 = vpop.eup %2984 }
 0x431   :  { %v385_v61 = vadd.f32 1.0, %v2985_v60 }
 0x433   :  { %2988 = vrcp.f32 %v385_v61 }
 0x43a   :  { %v2987_v62 = vpop.eup %2986 }
 0x43b   :  { %v559_v63 = vadd.f32 1.0, %v2987_v62 }
 0x43d   :  { %2990 = vrcp.f32 %v559_v63 }
 0x440   :  { %v2989_v0 = vpop.eup %2988 }
 0x441   :  { %v388_v2 = vmul.f32 2.0, %v2989_v0  ;;  %v390_v16 = vmul.f32 0.0, %v2989_v0 }
 0x443   :  { %v2504_v3 = vadd.f32 -1.0, %v388_v2 }
 0x445   :  { %392 = vrot.lane.b32.xlu1 %v2504_v3, %s3137_s0 }
 0x44a   :  { %v2991_v4 = vpop.eup %2990 }
 0x44b   :  { %v562_v5 = vmul.f32 2.0, %v2991_v4  ;;  %v567_v21 = vmul.f32 %v2991_v4, %v565_v19 }
 0x44d   :  { %v2508_v6 = vadd.f32 -1.0, %v562_v5 }
 0x44f   :  { %569 = vrot.lane.b32.xlu0 %v2508_v6, %s3137_s0 }
 0x4b7   :  { %v393_v7 = vpop.permute.xlu1 %392 }
 0x4b8   :  { %v395_v8 = vmul.f32 %v2989_v0, %v393_v7 }
 0x4ba   :  { %397 = vrot.lane.b32.xlu1 %v395_v8, %s3138_s1 }
 0x4c1   :  { %v570_v10 = vpop.permute.xlu0 %569 }
 0x4c2   :  { %v572_v15 = vmul.f32 %v2991_v4, %v570_v10 }
 0x4c4   :  { %574 = vrot.lane.b32.xlu0 %v572_v15, %s3138_s1 }
 0x52c   :  { %v398_v17 = vpop.permute.xlu1 %397 }
 0x52d   :  { %v3282_v18 = vadd.f32 %v398_v17, %v390_v16 }
 0x52f   :  { %2992 = vtanh.f32 %v3282_v18 }
 0x536   :  { %v575_v22 = vpop.permute.xlu0 %574 }
 0x537   :  { %v3286_v23 = vadd.f32 %v575_v22, %v567_v21 }
 0x539   :  { %2994 = vtanh.f32 %v3286_v23  ;;  %v844_v8 = vrot.slane %v3286_v23, 7 }
 0x53c   :  { %v2993_v24 = vpop.eup %2992 }
 0x53d   :  { %403 = vrot.lane.b32.xlu1 %v2993_v24, %s3137_s0 }
 0x546   :  { %v2995_v25 = vpop.eup %2994 }
 0x547   :  { %580 = vrot.lane.b32.xlu0 %v2995_v25, %s3137_s0 }
 0x5af   :  { %v404_v26 = vpop.permute.xlu1 %403 }
 0x5b0   :  { %v3291_v27 = vmul.f32 %v2989_v0, %v404_v26 }
 0x5b2   :  { %408 = vrot.lane.b32.xlu1 %v3291_v27, %s3138_s1 }
 0x5b9   :  { %v581_v28 = vpop.permute.xlu0 %580 }
 0x5ba   :  { %v583_v29 = vmul.f32 %v2991_v4, %v581_v28 }
 0x5bc   :  { %v585_v30 = vrot.slane %v583_v29, 1 }
 0x5be   :  { %586 = vrot.lane.b32.xlu0 %v585_v30, %s3138_s1 }
 0x624   :  { %v409_v31 = vpop.permute.xlu1 %408 }
 0x625   :  { %2735 = vmatmul.mubr.msk.f32.vlgmr.msra.gmra.mxu0 %vm136_vm3, %v409_v31 }
 0x626   :  { %2749 = vmatpush3.msra.mxu0 %v3225_v39  ;;  %2756 = vmatprep.mubr.msk.f32.mxu0 %vm3136_vm0, %v3135_v1 }
 0x627   :  { %2750 = vmatprep.subr.mxu0 %v3135_v1 }
 0x628   :  { %2751 = vmatpush3.msra.mxu0 %v3232_v40 }
 0x629   :  { %2752 = vmatprep.subr.mxu0 %v3135_v1 }
 0x62a   :  { %2753 = vmatpush3.msra.mxu0 %v3238_v42 }
 0x62b   :  { %2754 = vmatprep.subr.mxu0 %v3135_v1 }
 0x62c   :  { %2755 = vmatpush3.msra.mxu0 %v3244_v43 }
 0x62d   :  { %2770 = vmatprep.subr.mxu0 %v3135_v1 }
 0x630   :  { %v587_v32 = vpop.permute.xlu0 %586 }
 0x631   :  { %2757 = vmatmul.mubr.msk.f32.vlgmr.msra.gmra.mxu0 %vm136_vm3, %v587_v32 }
 0x632   :  { %2771 = vmatpush3.msra.mxu0 %v3170_v9  ;;  %2778 = vmatprep.mubr.msk.f32.mxu0 %vm3136_vm0, %v3135_v1 }
 0x633   :  { %2772 = vmatprep.subr.mxu0 %v3135_v1 }
 0x634   :  { %2773 = vmatpush3.msra.mxu0 %v3173_v11 }
 0x635   :  { %2774 = vmatprep.subr.mxu0 %v3135_v1 }
 0x636   :  { %2775 = vmatpush3.msra.mxu0 %v3179_v12 }
 0x637   :  { %2776 = vmatprep.subr.mxu0 %v3135_v1 }
 0x638   :  { %2777 = vmatpush3.msra.mxu0 %v3183_v13 }
 0x639   :  { %2779 = vmatmul.mubr.msk.f32.vlgmr.msra.gmra.mxu0 %vm136_vm3, %v587_v32  ;;  %2792 = vmatprep.subr.mxu0 %v3135_v1 }
 0x63a   :  { %2793 = vmatpush3.msra.mxu0 %v3206_v35  ;;  %2800 = vmatprep.mubr.msk.f32.mxu0 %vm3136_vm0, %v3135_v1 }
 0x63b   :  { %2794 = vmatprep.subr.mxu0 %v3135_v1 }
 0x63c   :  { %2795 = vmatpush3.msra.mxu0 %v3208_v36 }
 0x63d   :  { %2796 = vmatprep.subr.mxu0 %v3135_v1 }
 0x63e   :  { %2797 = vmatpush3.msra.mxu0 %v3213_v37 }
 0x63f   :  { %2798 = vmatprep.subr.mxu0 %v3135_v1 }
 0x640   :  { %2799 = vmatpush3.msra.mxu0 %v3219_v38 }
 0x641   :  { %2814 = vmatprep.subr.mxu0 %v3135_v1 }
 0x6e5   :  { %v478_v33 = vpop.f32.mrf.mxu0 }
 0x6e6   :  { %v479_v41 = vadd.f32 %v478_v33, %v3274_v49 }
 0x6e7   :  { %v2736_v34 = vpop.f32.mrf.mxu0 }
 0x6f1   :  { %v656_v44 = vpop.f32.mrf.mxu0 }
 0x6f2   :  { %v660_v45 = vadd.f32 %v656_v44, %v479_v41 }
 0x6f3   :  { %v2758_v46 = vpop.f32.mrf.mxu0 }
 0x6f4   :  { %v2510_v47 = vmul.f32 -1.442695, %v660_v45 }
 0x6f6   :  { %2996 = vpow2.f32 %v2510_v47 }
 0x6f9   :  { %v827_v48 = vpop.f32.mrf.mxu0 }
 0x6fa   :  { %v832_v50 = vrot.slane %v827_v48, 6 }
 0x6fb   :  { %v2780_v51 = vpop.f32.mrf.mxu0 }
 0x6fc   :  { %v834_v52 = vadd.f32 %v832_v50, %v3198_v20 }
 0x6fe   :  { %v2514_v53 = vmul.f32 -1.442695, %v834_v52 }
 0x700   :  { %2998 = vpow2.f32 %v2514_v53 }
 0x703   :  { %v2997_v54 = vpop.eup %2996 }
 0x704   :  { %v664_v55 = vadd.f32 1.0, %v2997_v54 }
 0x706   :  { %3000 = vrcp.f32 %v664_v55 }
 0x70d   :  { %v2999_v56 = vpop.eup %2998 }
 0x70e   :  { %v838_v57 = vadd.f32 1.0, %v2999_v56 }
 0x710   :  { %3002 = vrcp.f32 %v838_v57 }
 0x713   :  { %v3001_v58 = vpop.eup %3000 }
 0x714   :  { %v667_v59 = vmul.f32 2.0, %v3001_v58  ;;  %v669_v5 = vmul.f32 %v3001_v58, %v3282_v18 }
 0x716   :  { %v2511_v60 = vadd.f32 -1.0, %v667_v59 }
 0x718   :  { %671 = vrot.lane.b32.xlu1 %v2511_v60, %s3137_s0 }
 0x71d   :  { %v3003_v61 = vpop.eup %3002 }
 0x71e   :  { %v841_v62 = vmul.f32 2.0, %v3003_v61  ;;  %v846_v10 = vmul.f32 %v3003_v61, %v844_v8 }
 0x720   :  { %v2515_v63 = vadd.f32 -1.0, %v841_v62 }
 0x722   :  { %848 = vrot.lane.b32.xlu0 %v2515_v63, %s3137_s0 }
 0x78a   :  { %v672_v0 = vpop.permute.xlu1 %671 }
 0x78b   :  { %v674_v2 = vmul.f32 %v3001_v58, %v672_v0 }
 0x78d   :  { %676 = vrot.lane.b32.xlu1 %v674_v2, %s3138_s1 }
 0x794   :  { %v849_v3 = vpop.permute.xlu0 %848 }
 0x795   :  { %v851_v4 = vmul.f32 %v3003_v61, %v849_v3 }
 0x797   :  { %853 = vrot.lane.b32.xlu0 %v851_v4, %s3138_s1 }
 0x7ff   :  { %v677_v6 = vpop.permute.xlu1 %676 }
 0x800   :  { %v3336_v7 = vadd.f32 %v677_v6, %v669_v5 }
 0x802   :  { %3004 = vtanh.f32 %v3336_v7 }
 0x809   :  { %v854_v15 = vpop.permute.xlu0 %853 }
 0x80a   :  { %v3340_v16 = vadd.f32 %v854_v15, %v846_v10 }
 0x80c   :  { %3006 = vtanh.f32 %v3340_v16  ;;  %v1123_v3 = vrot.slane %v3340_v16, 7 }
 0x80f   :  { %v3005_v17 = vpop.eup %3004 }
 0x810   :  { %682 = vrot.lane.b32.xlu1 %v3005_v17, %s3137_s0 }
 0x819   :  { %v3007_v19 = vpop.eup %3006 }
 0x81a   :  { %859 = vrot.lane.b32.xlu0 %v3007_v19, %s3137_s0 }
 0x882   :  { %v683_v18 = vpop.permute.xlu1 %682 }
 0x883   :  { %v3345_v21 = vmul.f32 %v3001_v58, %v683_v18 }
 0x885   :  { %687 = vrot.lane.b32.xlu1 %v3345_v21, %s3138_s1 }
 0x88c   :  { %v860_v22 = vpop.permute.xlu0 %859 }
 0x88d   :  { %v862_v23 = vmul.f32 %v3003_v61, %v860_v22 }
 0x88f   :  { %v864_v24 = vrot.slane %v862_v23, 2 }
 0x891   :  { %865 = vrot.lane.b32.xlu0 %v864_v24, %s3138_s1 }
 0x8f7   :  { %v688_v25 = vpop.permute.xlu1 %687 }
 0x8f8   :  { %2768 = vmatmul.mubr.msk.f32.vlgmr.msra.gmra.mxu1 %vm136_vm3, %v688_v25 }
 0x8f9   :  { %2782 = vmatpush3.msra.mxu1 %v3225_v39  ;;  %2789 = vmatprep.mubr.msk.f32.mxu1 %vm3136_vm0, %v3135_v1 }
 0x8fa   :  { %2783 = vmatprep.subr.mxu1 %v3135_v1 }
 0x8fb   :  { %2784 = vmatpush3.msra.mxu1 %v3232_v40 }
 0x8fc   :  { %2785 = vmatprep.subr.mxu1 %v3135_v1 }
 0x8fd   :  { %2786 = vmatpush3.msra.mxu1 %v3238_v42 }
 0x8fe   :  { %2787 = vmatprep.subr.mxu1 %v3135_v1 }
 0x8ff   :  { %2788 = vmatpush3.msra.mxu1 %v3244_v43 }
 0x900   :  { %2803 = vmatprep.subr.mxu1 %v3135_v1 }
 0x903   :  { %v866_v26 = vpop.permute.xlu0 %865 }
 0x904   :  { %2790 = vmatmul.mubr.msk.f32.vlgmr.msra.gmra.mxu1 %vm136_vm3, %v866_v26 }
 0x905   :  { %2804 = vmatpush3.msra.mxu1 %v3170_v9  ;;  %2811 = vmatprep.mubr.msk.f32.mxu1 %vm3136_vm0, %v3135_v1 }
 0x906   :  { %2805 = vmatprep.subr.mxu1 %v3135_v1 }
 0x907   :  { %2806 = vmatpush3.msra.mxu1 %v3173_v11 }
 0x908   :  { %2807 = vmatprep.subr.mxu1 %v3135_v1 }
 0x909   :  { %2808 = vmatpush3.msra.mxu1 %v3179_v12 }
 0x90a   :  { %2809 = vmatprep.subr.mxu1 %v3135_v1 }
 0x90b   :  { %2810 = vmatpush3.msra.mxu1 %v3183_v13 }
 0x90c   :  { %2812 = vmatmul.mubr.msk.f32.vlgmr.msra.gmra.mxu1 %vm136_vm3, %v866_v26  ;;  %2825 = vmatprep.subr.mxu1 %v3135_v1 }
 0x90d   :  { %2826 = vmatpush3.msra.mxu1 %v3206_v35  ;;  %2833 = vmatprep.mubr.msk.f32.mxu1 %vm3136_vm0, %v3135_v1 }
 0x90e   :  { %2827 = vmatprep.subr.mxu1 %v3135_v1 }
 0x90f   :  { %2828 = vmatpush3.msra.mxu1 %v3208_v36 }
 0x910   :  { %2829 = vmatprep.subr.mxu1 %v3135_v1 }
 0x911   :  { %2830 = vmatpush3.msra.mxu1 %v3213_v37 }
 0x912   :  { %2831 = vmatprep.subr.mxu1 %v3135_v1 }
 0x913   :  { %2832 = vmatpush3.msra.mxu1 %v3219_v38 }
 0x914   :  { %2847 = vmatprep.subr.mxu1 %v3135_v1 }
 0x9b8   :  { %v757_v28 = vpop.f32.mrf.mxu1 }
 0x9b9   :  { %v758_v30 = vadd.f32 %v757_v28, %v3274_v49 }
 0x9ba   :  { %v2769_v29 = vpop.f32.mrf.mxu1 }
 0x9c4   :  { %v935_v31 = vpop.f32.mrf.mxu1 }
 0x9c5   :  { %v939_v32 = vadd.f32 %v935_v31, %v758_v30 }
 0x9c6   :  { %v2791_v33 = vpop.f32.mrf.mxu1 }
 0x9c7   :  { %v2517_v34 = vmul.f32 -1.442695, %v939_v32 }
 0x9c9   :  { %3008 = vpow2.f32 %v2517_v34 }
 0x9cc   :  { %v1106_v41 = vpop.f32.mrf.mxu1 }
 0x9cd   :  { %v1111_v44 = vrot.slane %v1106_v41, 5 }
 0x9ce   :  { %v2813_v45 = vpop.f32.mrf.mxu1 }
 0x9cf   :  { %v1113_v46 = vadd.f32 %v1111_v44, %v3198_v20 }
 0x9d1   :  { %v2521_v47 = vmul.f32 -1.442695, %v1113_v46 }
 0x9d3   :  { %3010 = vpow2.f32 %v2521_v47 }
 0x9d6   :  { %v3009_v48 = vpop.eup %3008 }
 0x9d7   :  { %v943_v50 = vadd.f32 1.0, %v3009_v48 }
 0x9d9   :  { %3012 = vrcp.f32 %v943_v50 }
 0x9e0   :  { %v3011_v51 = vpop.eup %3010 }
 0x9e1   :  { %v1117_v52 = vadd.f32 1.0, %v3011_v51 }
 0x9e3   :  { %3014 = vrcp.f32 %v1117_v52 }
 0x9e6   :  { %v3013_v53 = vpop.eup %3012 }
 0x9e7   :  { %v946_v54 = vmul.f32 2.0, %v3013_v53  ;;  %v948_v63 = vmul.f32 %v3013_v53, %v3336_v7  ;;  %v2360_v7 = vrot.slane %v3345_v21, 7 }
 0x9e9   :  { %v2518_v55 = vadd.f32 -1.0, %v946_v54  ;;  %v2376_v16 = vsel %vm2375_vm4, %v3291_v27, %v2360_v7 }
 0x9eb   :  { %950 = vrot.lane.b32.xlu1 %v2518_v55, %s3137_s0 }
 0x9f0   :  { %v3015_v56 = vpop.eup %3014 }
 0x9f1   :  { %v1120_v57 = vmul.f32 2.0, %v3015_v56  ;;  %v1125_v4 = vmul.f32 %v3015_v56, %v1123_v3 }
 0x9f3   :  { %v2522_v58 = vadd.f32 -1.0, %v1120_v57 }
 0x9f5   :  { %1127 = vrot.lane.b32.xlu0 %v2522_v58, %s3137_s0 }
 0xa5d   :  { %v951_v59 = vpop.permute.xlu1 %950 }
 0xa5e   :  { %v953_v60 = vmul.f32 %v3013_v53, %v951_v59 }
 0xa60   :  { %955 = vrot.lane.b32.xlu1 %v953_v60, %s3138_s1 }
 0xa67   :  { %v1128_v61 = vpop.permute.xlu0 %1127 }
 0xa68   :  { %v1130_v62 = vmul.f32 %v3015_v56, %v1128_v61 }
 0xa6a   :  { %1132 = vrot.lane.b32.xlu0 %v1130_v62, %s3138_s1 }
 0xad2   :  { %v956_v0 = vpop.permute.xlu1 %955 }
 0xad3   :  { %v3390_v2 = vadd.f32 %v956_v0, %v948_v63 }
 0xad5   :  { %3016 = vtanh.f32 %v3390_v2 }
 0xadc   :  { %v1133_v5 = vpop.permute.xlu0 %1132 }
 0xadd   :  { %v3394_v6 = vadd.f32 %v1133_v5, %v1125_v4 }
 0xadf   :  { %3018 = vtanh.f32 %v3394_v6  ;;  %v1402_v0 = vrot.slane %v3394_v6, 7 }
 0xae2   :  { %v3017_v8 = vpop.eup %3016 }
 0xae3   :  { %961 = vrot.lane.b32.xlu1 %v3017_v8, %s3137_s0 }
 0xaec   :  { %v3019_v10 = vpop.eup %3018 }
 0xaed   :  { %1138 = vrot.lane.b32.xlu0 %v3019_v10, %s3137_s0 }
 0xb55   :  { %v962_v15 = vpop.permute.xlu1 %961 }
 0xb56   :  { %v964_v17 = vmul.f32 %v3013_v53, %v962_v15 }
 0xb58   :  { %v2362_v19 = vrot.slane %v964_v17, 6  ;;  %966 = vrot.lane.b32.xlu1 %v964_v17, %s3138_s1 }
 0xb5a   :  { %v3402_v18 = vsel %vm2377_vm5, %v2376_v16, %v2362_v19 }
 0xb5f   :  { %v1139_v22 = vpop.permute.xlu0 %1138 }
 0xb60   :  { %v1141_v23 = vmul.f32 %v3015_v56, %v1139_v22 }
 0xb62   :  { %v1143_v24 = vrot.slane %v1141_v23, 3 }
 0xb64   :  { %1144 = vrot.lane.b32.xlu0 %v1143_v24, %s3138_s1 }
 0xbca   :  { %v967_v25 = vpop.permute.xlu1 %966 }
 0xbcb   :  { %2801 = vmatmul.mubr.msk.f32.vlgmr.msra.gmra.mxu0 %vm136_vm3, %v967_v25 }
 0xbcc   :  { %2815 = vmatpush3.msra.mxu0 %v3225_v39  ;;  %2822 = vmatprep.mubr.msk.f32.mxu0 %vm3136_vm0, %v3135_v1 }
 0xbcd   :  { %2816 = vmatprep.subr.mxu0 %v3135_v1 }
 0xbce   :  { %2817 = vmatpush3.msra.mxu0 %v3232_v40 }
 0xbcf   :  { %2818 = vmatprep.subr.mxu0 %v3135_v1 }
 0xbd0   :  { %2819 = vmatpush3.msra.mxu0 %v3238_v42 }
 0xbd1   :  { %2820 = vmatprep.subr.mxu0 %v3135_v1 }
 0xbd2   :  { %2821 = vmatpush3.msra.mxu0 %v3244_v43 }
 0xbd3   :  { %2836 = vmatprep.subr.mxu0 %v3135_v1 }
 0xbd6   :  { %v1145_v27 = vpop.permute.xlu0 %1144 }
 0xbd7   :  { %2823 = vmatmul.mubr.msk.f32.vlgmr.msra.gmra.mxu0 %vm136_vm3, %v1145_v27 }
 0xbd8   :  { %2837 = vmatpush3.msra.mxu0 %v3170_v9  ;;  %2844 = vmatprep.mubr.msk.f32.mxu0 %vm3136_vm0, %v3135_v1 }
 0xbd9   :  { %2838 = vmatprep.subr.mxu0 %v3135_v1 }
 0xbda   :  { %2839 = vmatpush3.msra.mxu0 %v3173_v11 }
 0xbdb   :  { %2840 = vmatprep.subr.mxu0 %v3135_v1 }
 0xbdc   :  { %2841 = vmatpush3.msra.mxu0 %v3179_v12 }
 0xbdd   :  { %2842 = vmatprep.subr.mxu0 %v3135_v1 }
 0xbde   :  { %2843 = vmatpush3.msra.mxu0 %v3183_v13 }
 0xbdf   :  { %2845 = vmatmul.mubr.msk.f32.vlgmr.msra.gmra.mxu0 %vm136_vm3, %v1145_v27  ;;  %2858 = vmatprep.subr.mxu0 %v3135_v1 }
 0xbe0   :  { %2859 = vmatpush3.msra.mxu0 %v3206_v35  ;;  %2866 = vmatprep.mubr.msk.f32.mxu0 %vm3136_vm0, %v3135_v1 }
 0xbe1   :  { %2860 = vmatprep.subr.mxu0 %v3135_v1 }
 0xbe2   :  { %2861 = vmatpush3.msra.mxu0 %v3208_v36 }
 0xbe3   :  { %2862 = vmatprep.subr.mxu0 %v3135_v1 }
 0xbe4   :  { %2863 = vmatpush3.msra.mxu0 %v3213_v37 }
 0xbe5   :  { %2864 = vmatprep.subr.mxu0 %v3135_v1 }
 0xbe6   :  { %2865 = vmatpush3.msra.mxu0 %v3219_v38 }
 0xbe7   :  { %2880 = vmatprep.subr.mxu0 %v3135_v1 }
 0xc8b   :  { %v1036_v21 = vpop.f32.mrf.mxu0 }
 0xc8c   :  { %v1037_v28 = vadd.f32 %v1036_v21, %v3274_v49 }
 0xc8d   :  { %v2802_v26 = vpop.f32.mrf.mxu0 }
 0xc97   :  { %v1214_v29 = vpop.f32.mrf.mxu0 }
 0xc98   :  { %v1218_v30 = vadd.f32 %v1214_v29, %v1037_v28 }
 0xc99   :  { %v2824_v31 = vpop.f32.mrf.mxu0 }
 0xc9a   :  { %v2524_v32 = vmul.f32 -1.442695, %v1218_v30 }
 0xc9c   :  { %3020 = vpow2.f32 %v2524_v32 }
 0xc9f   :  { %v1385_v33 = vpop.f32.mrf.mxu0 }
 0xca0   :  { %v1390_v34 = vrot.slane %v1385_v33, 4 }
 0xca1   :  { %v2846_v41 = vpop.f32.mrf.mxu0 }
 0xca2   :  { %v1392_v44 = vadd.f32 %v1390_v34, %v3198_v20 }
 0xca4   :  { %v2528_v45 = vmul.f32 -1.442695, %v1392_v44 }
 0xca6   :  { %3022 = vpow2.f32 %v2528_v45 }
 0xca9   :  { %v3021_v46 = vpop.eup %3020 }
 0xcaa   :  { %v1222_v47 = vadd.f32 1.0, %v3021_v46 }
 0xcac   :  { %3024 = vrcp.f32 %v1222_v47 }
 0xcb3   :  { %v3023_v48 = vpop.eup %3022 }
 0xcb4   :  { %v1396_v50 = vadd.f32 1.0, %v3023_v48 }
 0xcb6   :  { %3026 = vrcp.f32 %v1396_v50 }
 0xcb9   :  { %v3025_v51 = vpop.eup %3024 }
 0xcba   :  { %v1225_v52 = vmul.f32 2.0, %v3025_v51  ;;  %v1227_v61 = vmul.f32 %v3025_v51, %v3390_v2 }
 0xcbc   :  { %v2525_v53 = vadd.f32 -1.0, %v1225_v52 }
 0xcbe   :  { %1229 = vrot.lane.b32.xlu1 %v2525_v53, %s3137_s0 }
 0xcc3   :  { %v3027_v54 = vpop.eup %3026 }
 0xcc4   :  { %v1399_v55 = vmul.f32 2.0, %v3027_v54  ;;  %v1404_v3 = vmul.f32 %v3027_v54, %v1402_v0 }
 0xcc6   :  { %v2529_v56 = vadd.f32 -1.0, %v1399_v55 }
 0xcc8   :  { %1406 = vrot.lane.b32.xlu0 %v2529_v56, %s3137_s0 }
 0xd30   :  { %v1230_v57 = vpop.permute.xlu1 %1229 }
 0xd31   :  { %v1232_v58 = vmul.f32 %v3025_v51, %v1230_v57 }
 0xd33   :  { %1234 = vrot.lane.b32.xlu1 %v1232_v58, %s3138_s1 }
 0xd3a   :  { %v1407_v59 = vpop.permute.xlu0 %1406 }
 0xd3b   :  { %v1409_v60 = vmul.f32 %v3027_v54, %v1407_v59 }
 0xd3d   :  { %1411 = vrot.lane.b32.xlu0 %v1409_v60, %s3138_s1 }
 0xda5   :  { %v1235_v62 = vpop.permute.xlu1 %1234 }
 0xda6   :  { %v3445_v63 = vadd.f32 %v1235_v62, %v1227_v61 }
 0xda8   :  { %3028 = vtanh.f32 %v3445_v63 }
 0xdaf   :  { %v1412_v4 = vpop.permute.xlu0 %1411 }
 0xdb0   :  { %v3449_v5 = vadd.f32 %v1412_v4, %v1404_v3 }
 0xdb2   :  { %3030 = vtanh.f32 %v3449_v5  ;;  %v1681_v56 = vrot.slane %v3449_v5, 7 }
 0xdb5   :  { %v3029_v8 = vpop.eup %3028 }
 0xdb6   :  { %1240 = vrot.lane.b32.xlu1 %v3029_v8, %s3137_s0 }
 0xdbf   :  { %v3031_v10 = vpop.eup %3030 }
 0xdc0   :  { %1417 = vrot.lane.b32.xlu0 %v3031_v10, %s3137_s0 }
 0xe28   :  { %v1241_v2 = vpop.permute.xlu1 %1240 }
 0xe29   :  { %v1243_v7 = vmul.f32 %v3025_v51, %v1241_v2 }
 0xe2b   :  { %v2364_v15 = vrot.slane %v1243_v7, 5  ;;  %1245 = vrot.lane.b32.xlu1 %v1243_v7, %s3138_s1 }
 0xe2d   :  { %v3456_v6 = vsel %vm2379_vm6, %v3402_v18, %v2364_v15 }
 0xe32   :  { %v1418_v17 = vpop.permute.xlu0 %1417 }
 0xe33   :  { %v1420_v19 = vmul.f32 %v3027_v54, %v1418_v17 }
 0xe35   :  { %v1422_v16 = vrot.slane %v1420_v19, 4 }
 0xe37   :  { %1423 = vrot.lane.b32.xlu0 %v1422_v16, %s3138_s1 }
 0xe9d   :  { %v1246_v22 = vpop.permute.xlu1 %1245 }
 0xe9e   :  { %2834 = vmatmul.mubr.msk.f32.vlgmr.msra.gmra.mxu1 %vm136_vm3, %v1246_v22 }
 0xe9f   :  { %2848 = vmatpush3.msra.mxu1 %v3225_v39  ;;  %2855 = vmatprep.mubr.msk.f32.mxu1 %vm3136_vm0, %v3135_v1 }
 0xea0   :  { %2849 = vmatprep.subr.mxu1 %v3135_v1 }
 0xea1   :  { %2850 = vmatpush3.msra.mxu1 %v3232_v40 }
 0xea2   :  { %2851 = vmatprep.subr.mxu1 %v3135_v1 }
 0xea3   :  { %2852 = vmatpush3.msra.mxu1 %v3238_v42 }
 0xea4   :  { %2853 = vmatprep.subr.mxu1 %v3135_v1 }
 0xea5   :  { %2854 = vmatpush3.msra.mxu1 %v3244_v43 }
 0xea6   :  { %2869 = vmatprep.subr.mxu1 %v3135_v1 }
 0xea9   :  { %v1424_v18 = vpop.permute.xlu0 %1423 }
 0xeaa   :  { %2856 = vmatmul.mubr.msk.f32.vlgmr.msra.gmra.mxu1 %vm136_vm3, %v1424_v18 }
 0xeab   :  { %2870 = vmatpush3.msra.mxu1 %v3170_v9  ;;  %2877 = vmatprep.mubr.msk.f32.mxu1 %vm3136_vm0, %v3135_v1 }
 0xeac   :  { %2871 = vmatprep.subr.mxu1 %v3135_v1 }
 0xead   :  { %2872 = vmatpush3.msra.mxu1 %v3173_v11 }
 0xeae   :  { %2873 = vmatprep.subr.mxu1 %v3135_v1 }
 0xeaf   :  { %2874 = vmatpush3.msra.mxu1 %v3179_v12 }
 0xeb0   :  { %2875 = vmatprep.subr.mxu1 %v3135_v1 }
 0xeb1   :  { %2876 = vmatpush3.msra.mxu1 %v3183_v13 }
 0xeb2   :  { %2878 = vmatmul.mubr.msk.f32.vlgmr.msra.gmra.mxu1 %vm136_vm3, %v1424_v18  ;;  %2891 = vmatprep.subr.mxu1 %v3135_v1 }
 0xeb3   :  { %2892 = vmatpush3.msra.mxu1 %v3206_v35  ;;  %2899 = vmatprep.mubr.msk.f32.mxu1 %vm3136_vm0, %v3135_v1 }
 0xeb4   :  { %2893 = vmatprep.subr.mxu1 %v3135_v1 }
 0xeb5   :  { %2894 = vmatpush3.msra.mxu1 %v3208_v36 }
 0xeb6   :  { %2895 = vmatprep.subr.mxu1 %v3135_v1 }
 0xeb7   :  { %2896 = vmatpush3.msra.mxu1 %v3213_v37 }
 0xeb8   :  { %2897 = vmatprep.subr.mxu1 %v3135_v1 }
 0xeb9   :  { %2898 = vmatpush3.msra.mxu1 %v3219_v38 }
 0xeba   :  { %2913 = vmatprep.subr.mxu1 %v3135_v1 }
 0xf5e   :  { %v1315_v9 = vpop.f32.mrf.mxu1 }
 0xf5f   :  { %v1316_v12 = vadd.f32 %v1315_v9, %v3274_v49 }
 0xf60   :  { %v2835_v11 = vpop.f32.mrf.mxu1 }
 0xf6a   :  { %v1493_v13 = vpop.f32.mrf.mxu1 }
 0xf6b   :  { %v1497_v23 = vadd.f32 %v1493_v13, %v1316_v12 }
 0xf6c   :  { %v2857_v24 = vpop.f32.mrf.mxu1 }
 0xf6d   :  { %v2531_v25 = vmul.f32 -1.442695, %v1497_v23 }
 0xf6f   :  { %3032 = vpow2.f32 %v2531_v25 }
 0xf72   :  { %v1664_v27 = vpop.f32.mrf.mxu1 }
 0xf73   :  { %v1669_v21 = vrot.slane %v1664_v27, 3 }
 0xf74   :  { %v2879_v26 = vpop.f32.mrf.mxu1 }
 0xf75   :  { %v1671_v28 = vadd.f32 %v1669_v21, %v3198_v20 }
 0xf77   :  { %v2535_v29 = vmul.f32 -1.442695, %v1671_v28 }
 0xf79   :  { %3034 = vpow2.f32 %v2535_v29 }
 0xf7c   :  { %v3033_v30 = vpop.eup %3032 }
 0xf7d   :  { %v1501_v31 = vadd.f32 1.0, %v3033_v30 }
 0xf7f   :  { %3036 = vrcp.f32 %v1501_v31 }
 0xf86   :  { %v3035_v32 = vpop.eup %3034 }
 0xf87   :  { %v1675_v33 = vadd.f32 1.0, %v3035_v32 }
 0xf89   :  { %3038 = vrcp.f32 %v1675_v33 }
 0xf8c   :  { %v3037_v34 = vpop.eup %3036 }
 0xf8d   :  { %v1504_v41 = vmul.f32 2.0, %v3037_v34  ;;  %v1506_v53 = vmul.f32 %v3037_v34, %v3445_v63 }
 0xf8f   :  { %v2532_v44 = vadd.f32 -1.0, %v1504_v41 }
 0xf91   :  { %1508 = vrot.lane.b32.xlu1 %v2532_v44, %s3137_s0 }
 0xf96   :  { %v3039_v45 = vpop.eup %3038 }
 0xf97   :  { %v1678_v46 = vmul.f32 2.0, %v3039_v45  ;;  %v1683_v57 = vmul.f32 %v3039_v45, %v1681_v56 }
 0xf99   :  { %v2536_v47 = vadd.f32 -1.0, %v1678_v46 }
 0xf9b   :  { %1685 = vrot.lane.b32.xlu0 %v2536_v47, %s3137_s0 }
0x1003   :  { %v1509_v48 = vpop.permute.xlu1 %1508 }
0x1004   :  { %v1511_v50 = vmul.f32 %v3037_v34, %v1509_v48 }
0x1006   :  { %1513 = vrot.lane.b32.xlu1 %v1511_v50, %s3138_s1 }
0x100d   :  { %v1686_v51 = vpop.permute.xlu0 %1685 }
0x100e   :  { %v1688_v52 = vmul.f32 %v3039_v45, %v1686_v51 }
0x1010   :  { %1690 = vrot.lane.b32.xlu0 %v1688_v52, %s3138_s1 }
0x1078   :  { %v1514_v54 = vpop.permute.xlu1 %1513 }
0x1079   :  { %v3499_v55 = vadd.f32 %v1514_v54, %v1506_v53 }
0x107b   :  { %3040 = vtanh.f32 %v3499_v55 }
0x1082   :  { %v1691_v58 = vpop.permute.xlu0 %1690 }
0x1083   :  { %v3503_v59 = vadd.f32 %v1691_v58, %v1683_v57  ;;  %v3576_v58 = vld [vmem:[#allocation2 + $0x50] sm:$0xff] }
0x1085   :  { %3042 = vtanh.f32 %v3503_v59  ;;  %v1960_v41 = vrot.slane %v3503_v59, 7  ;;  %v3582_v59 = vld [vmem:[#allocation2 + $0x48] sm:$0xff] }
0x1088   :  { %v3041_v60 = vpop.eup %3040 }
0x1089   :  { %1519 = vrot.lane.b32.xlu1 %v3041_v60, %s3137_s0  ;;  %v3586_v60 = vld [vmem:[#allocation2 + $0x40] sm:$0xff] }
0x1092   :  { %v3043_v61 = vpop.eup %3042 }
0x1093   :  { %1696 = vrot.lane.b32.xlu0 %v3043_v61, %s3137_s0  ;;  %v3590_v61 = vld [vmem:[#allocation2 + $0x38] sm:$0xff] }
0x10fb   :  { %v1520_v62 = vpop.permute.xlu1 %1519 }
0x10fc   :  { %v1522_v63 = vmul.f32 %v3037_v34, %v1520_v62 }
0x10fe   :  { %v2366_v0 = vrot.slane %v1522_v63, 4  ;;  %1524 = vrot.lane.b32.xlu1 %v1522_v63, %s3138_s1 }
0x1100   :  { %v3510_v3 = vsel %vm2381_vm7, %v3456_v6, %v2366_v0 }
0x1105   :  { %v1697_v4 = vpop.permute.xlu0 %1696 }
0x1106   :  { %v1699_v5 = vmul.f32 %v3039_v45, %v1697_v4 }
0x1108   :  { %v1701_v8 = vrot.slane %v1699_v5, 5 }
0x110a   :  { %1702 = vrot.lane.b32.xlu0 %v1701_v8, %s3138_s1 }
0x1170   :  { %v1525_v10 = vpop.permute.xlu1 %1524 }
0x1171   :  { %2867 = vmatmul.mubr.msk.f32.vlgmr.msra.gmra.mxu0 %vm136_vm3, %v1525_v10 }
0x1172   :  { %2881 = vmatpush3.msra.mxu0 %v3225_v39  ;;  %2888 = vmatprep.mubr.msk.f32.mxu0 %vm3136_vm0, %v3135_v1  ;;  %v3525_v39 = vld [vmem:[#allocation2 + $0x30] sm:$0xff] }
0x1173   :  { %2882 = vmatprep.subr.mxu0 %v3135_v1 }
0x1174   :  { %2883 = vmatpush3.msra.mxu0 %v3232_v40  ;;  %v3531_v40 = vld [vmem:[#allocation2 + $0x28] sm:$0xff] }
0x1175   :  { %2884 = vmatprep.subr.mxu0 %v3135_v1 }
0x1176   :  { %2885 = vmatpush3.msra.mxu0 %v3238_v42  ;;  %v3535_v42 = vld [vmem:[#allocation2 + $0x20] sm:$0xff] }
0x1177   :  { %2886 = vmatprep.subr.mxu0 %v3135_v1 }
0x1178   :  { %2887 = vmatpush3.msra.mxu0 %v3244_v43  ;;  %v3539_v43 = vld [vmem:[#allocation2 + $0x18] sm:$0xff] }
0x1179   :  { %2902 = vmatprep.subr.mxu0 %v3135_v1 }
0x117c   :  { %v1703_v2 = vpop.permute.xlu0 %1702 }
0x117d   :  { %2889 = vmatmul.mubr.msk.f32.vlgmr.msra.gmra.mxu0 %vm136_vm3, %v1703_v2 }
0x117e   :  { %2903 = vmatpush3.msra.mxu0 %v3525_v39  ;;  %2910 = vmatprep.mubr.msk.f32.mxu0 %vm3136_vm0, %v3135_v1 }
0x117f   :  { %2904 = vmatprep.subr.mxu0 %v3135_v1 }
0x1180   :  { %2905 = vmatpush3.msra.mxu0 %v3531_v40 }
0x1181   :  { %2906 = vmatprep.subr.mxu0 %v3135_v1 }
0x1182   :  { %2907 = vmatpush3.msra.mxu0 %v3535_v42 }
0x1183   :  { %2908 = vmatprep.subr.mxu0 %v3135_v1 }
0x1184   :  { %2909 = vmatpush3.msra.mxu0 %v3539_v43 }
0x1185   :  { %2911 = vmatmul.mubr.msk.f32.vlgmr.msra.gmra.mxu0 %vm136_vm3, %v1703_v2  ;;  %2924 = vmatprep.subr.mxu0 %v3135_v1 }
0x1186   :  { %2925 = vmatpush3.msra.mxu0 %v3206_v35  ;;  %2932 = vmatprep.mubr.msk.f32.mxu0 %vm3136_vm0, %v3135_v1 }
0x1187   :  { %2926 = vmatprep.subr.mxu0 %v3135_v1 }
0x1188   :  { %2927 = vmatpush3.msra.mxu0 %v3208_v36 }
0x1189   :  { %2928 = vmatprep.subr.mxu0 %v3135_v1 }
0x118a   :  { %2929 = vmatpush3.msra.mxu0 %v3213_v37 }
0x118b   :  { %2930 = vmatprep.subr.mxu0 %v3135_v1 }
0x118c   :  { %2931 = vmatpush3.msra.mxu0 %v3219_v38 }
0x118d   :  { %2946 = vmatprep.subr.mxu0 %v3135_v1 }
0x1231   :  { %v1594_v7 = vpop.f32.mrf.mxu0 }
0x1232   :  { %v1595_v35 = vadd.f32 %v1594_v7, %v3274_v49 }
0x1233   :  { %v2868_v15 = vpop.f32.mrf.mxu0 }
0x123d   :  { %v1772_v6 = vpop.f32.mrf.mxu0 }
0x123e   :  { %v1776_v17 = vadd.f32 %v1772_v6, %v1595_v35 }
0x123f   :  { %v2890_v19 = vpop.f32.mrf.mxu0 }
0x1240   :  { %v2538_v16 = vmul.f32 -1.442695, %v1776_v17 }
0x1242   :  { %3044 = vpow2.f32 %v2538_v16 }
0x1245   :  { %v1943_v36 = vpop.f32.mrf.mxu0 }
0x1246   :  { %v1948_v22 = vrot.slane %v1943_v36, 2 }
0x1247   :  { %v2912_v18 = vpop.f32.mrf.mxu0 }
0x1248   :  { %v1950_v37 = vadd.f32 %v1948_v22, %v3198_v20 }
0x124a   :  { %v2542_v9 = vmul.f32 -1.442695, %v1950_v37 }
0x124c   :  { %3046 = vpow2.f32 %v2542_v9 }
0x124f   :  { %v3045_v11 = vpop.eup %3044 }
0x1250   :  { %v1780_v38 = vadd.f32 1.0, %v3045_v11 }
0x1252   :  { %3048 = vrcp.f32 %v1780_v38 }
0x1259   :  { %v3047_v12 = vpop.eup %3046 }
0x125a   :  { %v1954_v13 = vadd.f32 1.0, %v3047_v12 }
0x125c   :  { %3050 = vrcp.f32 %v1954_v13 }
0x125f   :  { %v3049_v23 = vpop.eup %3048 }
0x1260   :  { %v1783_v24 = vmul.f32 2.0, %v3049_v23  ;;  %v1785_v32 = vmul.f32 %v3049_v23, %v3499_v55 }
0x1262   :  { %v2539_v25 = vadd.f32 -1.0, %v1783_v24 }
0x1264   :  { %1787 = vrot.lane.b32.xlu1 %v2539_v25, %s3137_s0 }
0x1269   :  { %v3051_v27 = vpop.eup %3050 }
0x126a   :  { %v1957_v21 = vmul.f32 2.0, %v3051_v27  ;;  %v1962_v44 = vmul.f32 %v3051_v27, %v1960_v41 }
0x126c   :  { %v2543_v26 = vadd.f32 -1.0, %v1957_v21 }
0x126e   :  { %1964 = vrot.lane.b32.xlu0 %v2543_v26, %s3137_s0 }
0x12d6   :  { %v1788_v28 = vpop.permute.xlu1 %1787 }
0x12d7   :  { %v1790_v29 = vmul.f32 %v3049_v23, %v1788_v28 }
0x12d9   :  { %1792 = vrot.lane.b32.xlu1 %v1790_v29, %s3138_s1 }
0x12e0   :  { %v1965_v30 = vpop.permute.xlu0 %1964 }
0x12e1   :  { %v1967_v31 = vmul.f32 %v3051_v27, %v1965_v30 }
0x12e3   :  { %1969 = vrot.lane.b32.xlu0 %v1967_v31, %s3138_s1 }
0x134b   :  { %v1793_v33 = vpop.permute.xlu1 %1792 }
0x134c   :  { %v3561_v34 = vadd.f32 %v1793_v33, %v1785_v32 }
0x134e   :  { %3052 = vtanh.f32 %v3561_v34 }
0x1355   :  { %v1970_v45 = vpop.permute.xlu0 %1969 }
0x1356   :  { %v3565_v46 = vadd.f32 %v1970_v45, %v1962_v44 }
0x1358   :  { %3054 = vtanh.f32 %v3565_v46 }
0x135b   :  { %v3053_v47 = vpop.eup %3052 }
0x135c   :  { %1798 = vrot.lane.b32.xlu1 %v3053_v47, %s3137_s0 }
0x1365   :  { %v3055_v48 = vpop.eup %3054 }
0x1366   :  { %1975 = vrot.lane.b32.xlu0 %v3055_v48, %s3137_s0 }
0x13ce   :  { %v1799_v50 = vpop.permute.xlu1 %1798 }
0x13cf   :  { %v1801_v51 = vmul.f32 %v3049_v23, %v1799_v50  ;;  %v2239_v23 = vrot.slane %v3565_v46, 7 }
0x13d1   :  { %v2368_v52 = vrot.slane %v1801_v51, 3  ;;  %1803 = vrot.lane.b32.xlu1 %v1801_v51, %s3138_s1 }
0x13d3   :  { %v3572_v53 = vsel %vm2383_vm8, %v3510_v3, %v2368_v52 }
0x13d8   :  { %v1976_v54 = vpop.permute.xlu0 %1975 }
0x13d9   :  { %v1978_v55 = vmul.f32 %v3051_v27, %v1976_v54 }
0x13db   :  { %v1980_v56 = vrot.slane %v1978_v55, 6 }
0x13dd   :  { %1981 = vrot.lane.b32.xlu0 %v1980_v56, %s3138_s1 }
0x1443   :  { %v1804_v57 = vpop.permute.xlu1 %1803 }
0x1444   :  { %2900 = vmatmul.mubr.msk.f32.vlgmr.msra.gmra.mxu1 %vm136_vm3, %v1804_v57 }
0x1445   :  { %2914 = vmatpush3.msra.mxu1 %v3576_v58  ;;  %2921 = vmatprep.mubr.msk.f32.mxu1 %vm3136_vm0, %v3135_v1 }
0x1446   :  { %2915 = vmatprep.subr.mxu1 %v3135_v1 }
0x1447   :  { %2916 = vmatpush3.msra.mxu1 %v3582_v59 }
0x1448   :  { %2917 = vmatprep.subr.mxu1 %v3135_v1 }
0x1449   :  { %2918 = vmatpush3.msra.mxu1 %v3586_v60 }
0x144a   :  { %2919 = vmatprep.subr.mxu1 %v3135_v1 }
0x144b   :  { %2920 = vmatpush3.msra.mxu1 %v3590_v61 }
0x144c   :  { %2935 = vmatprep.subr.mxu1 %v3135_v1 }
0x144f   :  { %v1982_v62 = vpop.permute.xlu0 %1981 }
0x1450   :  { %2922 = vmatmul.mubr.msk.f32.vlgmr.msra.gmra.mxu1 %vm136_vm3, %v1982_v62 }
0x1451   :  { %2936 = vmatpush3.msra.mxu1 %v3525_v39  ;;  %2943 = vmatprep.mubr.msk.f32.mxu1 %vm3136_vm0, %v3135_v1 }
0x1452   :  { %2937 = vmatprep.subr.mxu1 %v3135_v1 }
0x1453   :  { %2938 = vmatpush3.msra.mxu1 %v3531_v40 }
0x1454   :  { %2939 = vmatprep.subr.mxu1 %v3135_v1 }
0x1455   :  { %2940 = vmatpush3.msra.mxu1 %v3535_v42 }
0x1456   :  { %2941 = vmatprep.subr.mxu1 %v3135_v1 }
0x1457   :  { %2942 = vmatpush3.msra.mxu1 %v3539_v43 }
0x1458   :  { %2944 = vmatmul.mubr.msk.f32.vlgmr.msra.gmra.mxu1 %vm136_vm3, %v1982_v62  ;;  %2957 = vmatprep.subr.mxu1 %v3135_v1  ;;  %v44_v62 = vld [vmem:[#allocation2 + $0x90] sm:$0xff] }
0x1459   :  { %2965 = vmatprep.mubr.msk.f32.mxu1 %vm3136_vm0, %v3135_v1  ;;  %2958 = vmatpush3.msra.mxu1 %v44_v62 }
0x145a   :  { %2959 = vmatprep.subr.mxu1 %v3135_v1 }
0x1504   :  { %v1873_v63 = vpop.f32.mrf.mxu1 }
0x1505   :  { %v1874_v3 = vadd.f32 %v1873_v63, %v3274_v49  ;;  %v43_v63 = vld [vmem:[#allocation2 + $0x88] sm:$0xff] }
0x1506   :  { %v2901_v0 = vpop.f32.mrf.mxu1  ;;  %2960 = vmatpush3.msra.mxu1 %v43_v63 }
0x1507   :  { %v42_v0 = vld [vmem:[#allocation2 + $0x80] sm:$0xff]  ;;  %2961 = vmatprep.subr.mxu1 %v3135_v1 }
0x1508   :  { %2962 = vmatpush3.msra.mxu1 %v42_v0 }
0x1509   :  { %2963 = vmatprep.subr.mxu1 %v3135_v1 }
0x1510   :  { %v2051_v4 = vpop.f32.mrf.mxu1 }
0x1511   :  { %v2055_v5 = vadd.f32 %v2051_v4, %v1874_v3  ;;  %v41_v3 = vld [vmem:[#allocation2 + $0x78] sm:$0xff] }
0x1512   :  { %v2923_v8 = vpop.f32.mrf.mxu1  ;;  %2964 = vmatpush3.msra.mxu1 %v41_v3 }
0x1513   :  { %v2545_v10 = vmul.f32 -1.442695, %v2055_v5 }
0x1515   :  { %3056 = vpow2.f32 %v2545_v10 }
0x1518   :  { %v2222_v2 = vpop.f32.mrf.mxu1 }
0x1519   :  { %v2227_v39 = vrot.slane %v2222_v2, 1 }
0x151a   :  { %v2945_v40 = vpop.f32.mrf.mxu1 }
0x151b   :  { %v2229_v42 = vadd.f32 %v2227_v39, %v3198_v20  ;;  %v2391_v40 = vsub.s32 2, %v3192_v14 }
0x151d   :  { %v2549_v43 = vmul.f32 -1.442695, %v2229_v42  ;;  %v3086_v42 = vld [vmem:[#allocation2 + $0x98] sm:$0xff] }
0x151f   :  { %3058 = vpow2.f32 %v2549_v43  ;;  %v2392_v43 = vrot.slane %v3086_v42, %v2391_v40 }
0x1522   :  { %v3057_v7 = vpop.eup %3056 }
0x1523   :  { %v2059_v15 = vadd.f32 1.0, %v3057_v7 }
0x1525   :  { %3060 = vrcp.f32 %v2059_v15 }
0x152c   :  { %v3059_v35 = vpop.eup %3058 }
0x152d   :  { %v2233_v6 = vadd.f32 1.0, %v3059_v35 }
0x152f   :  { %3062 = vrcp.f32 %v2233_v6 }
0x1532   :  { %v3061_v17 = vpop.eup %3060 }
0x1533   :  { %v2062_v19 = vmul.f32 2.0, %v3061_v17  ;;  %v2064_v38 = vmul.f32 %v3061_v17, %v3561_v34 }
0x1535   :  { %v2546_v16 = vadd.f32 -1.0, %v2062_v19 }
0x1537   :  { %2066 = vrot.lane.b32.xlu1 %v2546_v16, %s3137_s0 }
0x153c   :  { %v3063_v36 = vpop.eup %3062 }
0x153d   :  { %v2236_v22 = vmul.f32 2.0, %v3063_v36  ;;  %v2241_v24 = vmul.f32 %v3063_v36, %v2239_v23 }
0x153f   :  { %v2550_v18 = vadd.f32 -1.0, %v2236_v22 }
0x1541   :  { %2243 = vrot.lane.b32.xlu0 %v2550_v18, %s3137_s0 }
0x15a9   :  { %v2067_v37 = vpop.permute.xlu1 %2066 }
0x15aa   :  { %v2069_v20 = vmul.f32 %v3061_v17, %v2067_v37 }
0x15ac   :  { %2071 = vrot.lane.b32.xlu1 %v2069_v20, %s3138_s1 }
0x15b3   :  { %v2244_v9 = vpop.permute.xlu0 %2243 }
0x15b4   :  { %v2246_v11 = vmul.f32 %v3063_v36, %v2244_v9 }
0x15b6   :  { %2248 = vrot.lane.b32.xlu0 %v2246_v11, %s3138_s1 }
0x161e   :  { %v2072_v12 = vpop.permute.xlu1 %2071 }
0x161f   :  { %v2074_v13 = vadd.f32 %v2072_v12, %v2064_v38 }
0x1621   :  { %3064 = vtanh.f32 %v2074_v13 }
0x1628   :  { %v2249_v25 = vpop.permute.xlu0 %2248 }
0x1629   :  { %v2251_v27 = vadd.f32 %v2249_v25, %v2241_v24 }
0x162b   :  { %3066 = vtanh.f32 %v2251_v27 }
0x162e   :  { %v3065_v21 = vpop.eup %3064 }
0x162f   :  { %2077 = vrot.lane.b32.xlu1 %v3065_v21, %s3137_s0 }
0x1638   :  { %v3067_v26 = vpop.eup %3066 }
0x1639   :  { %2254 = vrot.lane.b32.xlu0 %v3067_v26, %s3137_s0 }
0x16a1   :  { %v2078_v28 = vpop.permute.xlu1 %2077 }
0x16a2   :  { %v2080_v29 = vmul.f32 %v3061_v17, %v2078_v28 }
0x16a4   :  { %v2370_v30 = vrot.slane %v2080_v29, 2  ;;  %2082 = vrot.lane.b32.xlu1 %v2080_v29, %s3138_s1 }
0x16a6   :  { %v2386_v31 = vsel %vm2385_vm9, %v3572_v53, %v2370_v30 }
0x16ab   :  { %v2255_v32 = vpop.permute.xlu0 %2254 }
0x16ac   :  { %v2257_v33 = vmul.f32 %v3063_v36, %v2255_v32 }
0x16ae   :  { %v2259_v34 = vrot.slane %v2257_v33, 7 }
0x16b0   :  { %2260 = vrot.lane.b32.xlu0 %v2259_v34, %s3138_s1 }
0x1716   :  { %v2083_v41 = vpop.permute.xlu1 %2082 }
0x1717   :  { %2933 = vmatmul.mubr.msk.f32.vlgmr.msra.gmra.mxu0 %vm136_vm3, %v2083_v41 }
0x1718   :  { %2947 = vmatpush3.msra.mxu0 %v3576_v58  ;;  %2954 = vmatprep.mubr.msk.f32.mxu0 %vm3136_vm0, %v3135_v1 }
0x1719   :  { %2948 = vmatprep.subr.mxu0 %v3135_v1 }
0x171a   :  { %2949 = vmatpush3.msra.mxu0 %v3582_v59 }
0x171b   :  { %2950 = vmatprep.subr.mxu0 %v3135_v1 }
0x171c   :  { %2951 = vmatpush3.msra.mxu0 %v3586_v60 }
0x171d   :  { %2952 = vmatprep.subr.mxu0 %v3135_v1 }
0x171e   :  { %2953 = vmatpush3.msra.mxu0 %v3590_v61 }
0x1722   :  { %v2261_v44 = vpop.permute.xlu0 %2260 }
0x1723   :  { %2955 = vmatmul.mubr.msk.f32.vlgmr.msra.gmra.mxu0 %vm136_vm3, %v2261_v44 }
0x17d7   :  { %v2152_v45 = vpop.f32.mrf.mxu0 }
0x17d8   :  { %v2153_v47 = vadd.f32 %v2152_v45, %v3274_v49 }
0x17d9   :  { %v2934_v46 = vpop.f32.mrf.mxu0 }
0x17e3   :  { %v2330_v48 = vpop.f32.mrf.mxu0 }
0x17e4   :  { %v2334_v50 = vadd.f32 %v2330_v48, %v2153_v47 }
0x17e5   :  { %v2956_v51 = vpop.f32.mrf.mxu0 }
0x17e6   :  { %v2552_v52 = vmul.f32 -1.442695, %v2334_v50 }
0x17e8   :  { %3068 = vpow2.f32 %v2552_v52 }
0x17f5   :  { %v3069_v53 = vpop.eup %3068 }
0x17f6   :  { %v2338_v54 = vadd.f32 1.0, %v3069_v53 }
0x17f8   :  { %3070 = vrcp.f32 %v2338_v54 }
0x1805   :  { %v3071_v55 = vpop.eup %3070 }
0x1806   :  { %v2341_v56 = vmul.f32 2.0, %v3071_v55  ;;  %v2343_v60 = vmul.f32 %v3071_v55, %v2074_v13 }
0x1808   :  { %v2553_v57 = vadd.f32 -1.0, %v2341_v56 }
0x180a   :  { %2345 = vrot.lane.b32.xlu1 %v2553_v57, %s3137_s0 }
0x187c   :  { %v2346_v58 = vpop.permute.xlu1 %2345 }
0x187d   :  { %v2348_v59 = vmul.f32 %v3071_v55, %v2346_v58 }
0x187f   :  { %2350 = vrot.lane.b32.xlu0 %v2348_v59, %s3138_s1 }
0x18f1   :  { %v2351_v61 = vpop.permute.xlu0 %2350 }
0x18f2   :  { %v2353_v49 = vadd.f32 %v2351_v61, %v2343_v60 }
0x18f4   :  { %3072 = vtanh.f32 %v2353_v49 }
0x1901   :  { %v3073_v4 = vpop.eup %3072 }
0x1902   :  { %2356 = vrot.lane.b32.xlu1 %v3073_v4, %s3137_s0 }
0x1974   :  { %v2357_v5 = vpop.permute.xlu1 %2356 }
0x1975   :  { %v2359_v8 = vmul.f32 %v3071_v55, %v2357_v5 }
0x1977   :  { %v2373_v10 = vrot.slane %v2359_v8, 1 }
0x1979   :  { %v2388_v2 = vsel %vm2387_vm10, %v2386_v31, %v2373_v10 }
0x197a   :  { %2394 = vrot.lane.b32.xlu0 %v2388_v2, %s3138_s1 }
0x19ec   :  { %v2395_v39 = vpop.permute.xlu0 %2394 }
0x19ed   :  { %2966 = vmatmul.mubr.msk.f32.vlgmr.msra.gmra.mxu1 %vm136_vm3, %v2395_v39 }
0x1aad   :  { %v2464_v7 = vpop.f32.mrf.mxu1 }
0x1aae   :  { %v2465_v1 = vadd.f32 %v2464_v7, %v2392_v43 }
0x1aaf   :  { %v2967_v15 = vpop.f32.mrf.mxu1 }
0x1ab0   :  { %v2469_v35 = vsel %vm2468_vm11, %v2465_v1, -inf }
0x1ab1   :  { %2470 = vmax.xlane.f32.xlu1 %v2469_v35 }
0x1b3a   :  { %v2471_v6 = vpop.xlane.xlu1 %2470 }
0x1b3b   :  { %v2472_v17 = vsub.f32 %v2465_v1, %v2471_v6 }
0x1b3d   :  { %v2473_v19 = vmul.f32 1.442695, %v2472_v17 }
0x1b3f   :  { %3074 = vpow2.f32 %v2473_v19 }
0x1b4c   :  { %v3075_v16 = vpop.eup %3074 }
0x1b4d   :  { %v2475_v36 = vsel %vm2468_vm11, %v3075_v16, 0.0 }
0x1b4e   :  { %2476 = vadd.xlane.f32.xlu0 %v2475_v36 }
0x1bd7   :  { %v2477_v22 = vpop.xlane.xlu0 %2476 }
0x1bd8   :  { %3076 = vlog2.f32 %v2477_v22 }
0x1be5   :  { %v3077_v14 = vpop.eup %3076 }
0x1be6   :  { %v2479_v18 = vmul.f32 0.6931472, %v3077_v14 }
0x1be8   :  { %v2480_v37 = vadd.f32 %v2479_v18, %v2471_v6 }
0x1bea   :  { %v2481_v20 = vsub.f32 %v2465_v1, %v2480_v37 }
0x1bec   :  { %2482 = vst.msk [vmem:[#allocation5] sm:$0xff] %vm2468_vm11, %v2481_v20 }
0x1bed   :  { %3118 = shalt.err (!%p3115_p9)
}
0x1bee   :  { %2492 = dma.vmem_to_hbm [thread:$0]  %s2490_s19, 128, %s3650_s2, [#allocation4]  }
0x1bef   :  { %3129 = dma.done.wait [#allocation4], 128  }
0x1bf0   :  { %3130 = vsyncadd [#allocation4], 4294967168 }
0x1bf1   :  { %2496 = vsyncpa [#allocation3], 1 }
0x1bf2   :  { %2497 = vsyncpa [#allocation4], 1 }

</bundles_post_ra>
